<compile_context>
chip_gen: v7x
topology: tpu7x:2x2x1
jax: 0.10.0
libtpu: 0.0.40
codegen_flags: <defaults>
</compile_context>

<pallas_src>
import jax
import jax.numpy as jnp
from jax.experimental import pallas as pl
from jax.experimental.pallas import tpu as pltpu

# ---- config (mirrors pointer_summarizer config, small synthetic sizes) ----
HIDDEN_DIM = 32
EMB_DIM = 16
VOCAB_SIZE = 64
POINTER_GEN = True
IS_COVERAGE = False   # coverage branch disabled (default config)

SUBLANES = 8          # f32 sublane tile
LANES = 128           # lane tile


def _round_up(x, m):
    return (x + m - 1) // m * m


def decoder_kernel(
    # inputs
    y_idx_ref,                                    # (B,)   int32  SMEM
    c_t_1_ref, h_prev_ref, c_prev_ref,            # (B,2H) (B,H) (B,H)
    enc_out_ref, enc_feat_ref, enc_mask_ref, enc_ext_ref,   # (B,T,2H)x2 (B,T) (B,T)i32
    embx_ref,                                     # (V,E)  = emb @ wx[2H:, :]  (folded)
    wx_c_ref, bx_ref,                             # (2H,E) (1,E)
    w_ih_ref, w_hh_ref, b_lstm_ref,               # (E,4H) (H,4H) (1,4H)
    w_dph_ref, w_dpc_ref, b_dp_ref, v_ref,        # (H,2H) (H,2H) (1,2H) (1,2H)
    w_pgc_ref, w_pgh_ref, w_pgcc_ref, w_pgx_ref, b_pg_ref,  # (1,2H)(1,H)(1,H)(1,E)(1,1)
    w_o1h_ref, w_o1c_ref, w_o2_ref, b_o2_ref,     # (H,H)(2H,H)(H,V)(1,V)  [b_o1 folded]
    # outputs
    final_ref,                                    # (B, VP)   lane-dense padded dist
    slab_ref,                                     # (B, SLAB) [h|c|c_t|attn|p_gen|0..]
    # scratch
    xg_ref,                                       # (B, E) VMEM
):
    B, TK, H2 = enc_out_ref.shape
    H = H2 // 2
    V = w_o2_ref.shape[1]
    VP = final_ref.shape[1]
    f32 = jnp.float32

    # ---- embedding row gather (already folded through x_context's emb block) ----
    # token ids come from SMEM; each row is a dynamic sublane slice of the table.
    for b in range(B):
        xg_ref[pl.ds(b, 1), :] = embx_ref[pl.ds(y_idx_ref[b], 1), :]

    # ---- x = x_context(cat(c_t_1, y_emb)) with split weights (no lane concat) ----
    x = (jnp.dot(c_t_1_ref[...], wx_c_ref[...], preferred_element_type=f32)
         + xg_ref[...] + bx_ref[...])                                     # (B,E)

    # ---- single-step LSTM cell (PyTorch gate order: i, f, g, o) ----
    gates = (jnp.dot(x, w_ih_ref[...], preferred_element_type=f32)
             + jnp.dot(h_prev_ref[...], w_hh_ref[...], preferred_element_type=f32)
             + b_lstm_ref[...])                                            # (B,4H)
    i_g = jax.nn.sigmoid(gates[:, 0 * H:1 * H])
    f_g = jax.nn.sigmoid(gates[:, 1 * H:2 * H])
    g_g = jnp.tanh(gates[:, 2 * H:3 * H])
    o_g = jax.nn.sigmoid(gates[:, 3 * H:4 * H])
    c_cell = f_g * c_prev_ref[...] + i_g * g_g
    h_t = o_g * jnp.tanh(c_cell)                                           # lstm_out

    # ---- attention (decode_proj applied with split weights on h/c halves) ----
    dec_fea = (jnp.dot(h_t, w_dph_ref[...], preferred_element_type=f32)
               + jnp.dot(c_cell, w_dpc_ref[...], preferred_element_type=f32)
               + b_dp_ref[...])                                            # (B,2H)
    att = jnp.tanh(enc_feat_ref[...] + dec_fea[:, None, :])                # (B,T,2H)
    scores = jnp.sum(att * v_ref[...][None, :, :], axis=-1)                # (B,T)
    s_max = jnp.max(scores, axis=-1, keepdims=True)
    e_s = jnp.exp(scores - s_max)
    softm = e_s * pl.reciprocal(jnp.sum(e_s, axis=-1, keepdims=True), approx=True)
    am = softm * enc_mask_ref[...]
    attn = am * pl.reciprocal(jnp.sum(am, axis=-1, keepdims=True), approx=True)

    # context vector: batched MXU contraction instead of mul + XLU reduce
    c_t = jnp.einsum('bqt,btd->bqd', attn[:, None, :], enc_out_ref[...],
                     preferred_element_type=f32).reshape(B, H2)            # (B,2H)

    # ---- p_gen (split row-vector weights; lane reductions) ----
    pg_logit = (jnp.sum(c_t * w_pgc_ref[...], axis=1, keepdims=True)
                + jnp.sum(h_t * w_pgh_ref[...], axis=1, keepdims=True)
                + jnp.sum(c_cell * w_pgcc_ref[...], axis=1, keepdims=True)
                + jnp.sum(x * w_pgx_ref[...], axis=1, keepdims=True)
                + b_pg_ref[...])
    p_gen = jax.nn.sigmoid(pg_logit)                                       # (B,1)

    # ---- vocab distribution (out1 with split weights, out1 bias pre-folded) ----
    o1 = (jnp.dot(h_t, w_o1h_ref[...], preferred_element_type=f32)
          + jnp.dot(c_t, w_o1c_ref[...], preferred_element_type=f32))      # (B,H)
    logits = jnp.dot(o1, w_o2_ref[...], preferred_element_type=f32) + b_o2_ref[...]
    l_max = jnp.max(logits, axis=-1, keepdims=True)
    e_l = jnp.exp(logits - l_max)
    vocab_dist = e_l * pl.reciprocal(jnp.sum(e_l, axis=-1, keepdims=True), approx=True)

    # ---- pointer: mix + extend + scatter_add as ONE one-hot contraction ----
    vocab_dist_ = p_gen * vocab_dist                                       # (B,V)
    attn_dist_ = (1.0 - p_gen) * attn                                      # (B,T)
    if VP > V:
        base = jnp.concatenate([vocab_dist_, jnp.zeros((B, VP - V), f32)], axis=1)
    else:
        base = vocab_dist_
    vext_iota = jax.lax.broadcasted_iota(jnp.int32, (B, TK, VP), 2)
    onehot3 = (vext_iota == enc_ext_ref[...][:, :, None]).astype(f32)      # (B,T,VP)
    scat = jnp.einsum('bqt,btv->bqv', attn_dist_[:, None, :], onehot3,
                      preferred_element_type=f32).reshape(B, VP)
    final_ref[...] = base + scat                                           # dense store

    # ---- packed lane-dense misc output slab (single full-width store) ----
    used = 4 * H + TK + 1
    pad = slab_ref.shape[1] - used
    slab_ref[...] = jnp.concatenate(
        [h_t, c_cell, c_t, attn, p_gen, jnp.zeros((B, pad), f32)], axis=1)


def init_params(key):
    H, E, V = HIDDEN_DIM, EMB_DIM, VOCAB_SIZE
    ks = jax.random.split(key, 16)

    def nrm(k, shape, s=0.1):
        return (s * jax.random.normal(k, shape)).astype(jnp.float32)

    def unif(k, shape, m=0.02):  # init_lstm_wt: uniform(-rand_unif_init_mag, +)
        return jax.random.uniform(k, shape, minval=-m, maxval=m).astype(jnp.float32)

    params = {}
    params["emb"] = nrm(ks[0], (V, E))                       # embedding (normal init)
    params["wx"] = nrm(ks[1], (2 * H + E, E))                # x_context
    params["bx"] = nrm(ks[2], (1, E))
    params["w_ih"] = unif(ks[3], (E, 4 * H))                 # LSTM weight_ih^T
    params["w_hh"] = unif(ks[4], (H, 4 * H))                 # LSTM weight_hh^T
    # init_lstm_wt: bias_ih and bias_hh both get forget-gate slice = 1 -> combined 2.0
    b = jnp.zeros((4 * H,), jnp.float32).at[H:2 * H].set(2.0)
    params["b_lstm"] = b[None, :]
    params["w_dp"] = nrm(ks[5], (2 * H, 2 * H))              # attention decode_proj
    params["b_dp"] = nrm(ks[6], (1, 2 * H))
    params["v"] = nrm(ks[7], (1, 2 * H))                     # attention v (no bias)
    params["w_pg"] = nrm(ks[8], (1, 4 * H + E))              # p_gen_linear
    params["b_pg"] = nrm(ks[9], (1, 1))
    params["w_o1"] = nrm(ks[10], (3 * H, H))                 # out1
    params["b_o1"] = nrm(ks[11], (1, H))
    params["w_o2"] = nrm(ks[12], (H, V))                     # out2 (normal init)
    params["b_o2"] = nrm(ks[13], (1, V))
    return params


def decoder_forward(params, y_t_1, s_t_1, encoder_outputs, encoder_feature,
                    enc_padding_mask, c_t_1, extra_zeros, enc_batch_extend_vocab,
                    coverage, step):
    # training-mode / step>0 path (the eval step==0 extra attention pass is skipped)
    # TODO(synk): eval-mode step==0 pre-attention recomputation of c_t is not included.
    H, E, V = HIDDEN_DIM, EMB_DIM, VOCAB_SIZE
    h_prev, c_prev = s_t_1
    B, TK, H2 = encoder_outputs.shape
    h_prev = h_prev.reshape(B, H)
    c_prev = c_prev.reshape(B, H)
    enc_feat = encoder_feature.reshape(B, TK, H2)
    n_extra = 0 if extra_zeros is None else extra_zeros.shape[1]
    VEXT = V + n_extra
    VP = _round_up(VEXT, LANES)                 # lane-dense extended-vocab width
    SLAB = _round_up(4 * H + TK + 1, LANES)     # packed misc output slab width
    BP = _round_up(B, SUBLANES)                 # fill all 8 f32 sublanes

    # Pre-split / pre-fold weights (in practice done once per model, not per step).
    wx = params["wx"]
    embx = params["emb"] @ wx[2 * H:]           # fold embedding through x_context
    wx_c = wx[:2 * H]
    w_dp = params["w_dp"]
    w_pg = params["w_pg"]
    w_o1 = params["w_o1"]
    b_o2_eff = params["b_o1"] @ params["w_o2"] + params["b_o2"]   # fold out1 bias

    def pad_rows(a, value=0.0):
        pad = BP - a.shape[0]
        if pad == 0:
            return a
        return jnp.concatenate(
            [a, jnp.full((pad,) + a.shape[1:], value, a.dtype)], axis=0)

    y_idx = pad_rows(y_t_1.reshape(B).astype(jnp.int32))
    inputs = (
        y_idx,
        pad_rows(c_t_1), pad_rows(h_prev), pad_rows(c_prev),
        pad_rows(encoder_outputs), pad_rows(enc_feat),
        pad_rows(enc_padding_mask, value=1.0),   # keep renorm finite on pad rows
        pad_rows(enc_batch_extend_vocab.astype(jnp.int32)),
        embx, wx_c, params["bx"],
        params["w_ih"], params["w_hh"], params["b_lstm"],
        w_dp[:H], w_dp[H:], params["b_dp"], params["v"],
        w_pg[:, :2 * H], w_pg[:, 2 * H:3 * H], w_pg[:, 3 * H:4 * H], w_pg[:, 4 * H:],
        params["b_pg"],
        w_o1[:H], w_o1[H:], params["w_o2"], b_o2_eff,
    )

    smem = pl.BlockSpec(memory_space=pltpu.MemorySpace.SMEM)
    vmem = pl.BlockSpec(memory_space=pltpu.MemorySpace.VMEM)
    out_shapes = (
        jax.ShapeDtypeStruct((BP, VP), jnp.float32),     # padded final_dist
        jax.ShapeDtypeStruct((BP, SLAB), jnp.float32),   # packed misc slab
    )

    final_pad, slab = pl.pallas_call(
        decoder_kernel,
        out_shape=out_shapes,
        in_specs=[smem] + [vmem] * (len(inputs) - 1),
        out_specs=(vmem, vmem),
        scratch_shapes=[pltpu.VMEM((BP, E), jnp.float32)],
    )(*inputs)

    final_dist = final_pad[:B, :VEXT]
    h_t = slab[:B, 0:H]
    c_cell = slab[:B, H:2 * H]
    c_t = slab[:B, 2 * H:4 * H]
    attn_dist = slab[:B, 4 * H:4 * H + TK]
    p_gen = slab[:B, 4 * H + TK:4 * H + TK + 1]
    s_t = (h_t[None], c_cell[None])
    return final_dist, s_t, c_t, attn_dist, p_gen, coverage


def reference_forward(params, y_t_1, s_t_1, encoder_outputs, encoder_feature,
                      enc_padding_mask, c_t_1, extra_zeros, enc_batch_extend_vocab):
    """Pure-JAX reference mirroring the PyTorch math (full, un-split weights)."""
    H = HIDDEN_DIM
    h_prev, c_prev = s_t_1
    B, TK, H2 = encoder_outputs.shape
    h_prev = h_prev.reshape(B, H)
    c_prev = c_prev.reshape(B, H)
    y_emb = params["emb"][y_t_1]
    x = jnp.concatenate([c_t_1, y_emb], 1) @ params["wx"] + params["bx"]
    gates = x @ params["w_ih"] + h_prev @ params["w_hh"] + params["b_lstm"]
    i = jax.nn.sigmoid(gates[:, :H]); f = jax.nn.sigmoid(gates[:, H:2 * H])
    g = jnp.tanh(gates[:, 2 * H:3 * H]); o = jax.nn.sigmoid(gates[:, 3 * H:])
    c_cell = f * c_prev + i * g
    h_t = o * jnp.tanh(c_cell)
    s_t_hat = jnp.concatenate([h_t, c_cell], 1)
    dec_fea = s_t_hat @ params["w_dp"] + params["b_dp"]
    att = jnp.tanh(encoder_feature.reshape(B, TK, H2) + dec_fea[:, None, :])
    scores = jnp.sum(att * params["v"][None], -1)
    softm = jax.nn.softmax(scores, axis=1)
    am = softm * enc_padding_mask
    attn = am / am.sum(1, keepdims=True)
    c_t = jnp.einsum('bk,bkd->bd', attn, encoder_outputs)
    pg_in = jnp.concatenate([c_t, s_t_hat, x], 1)
    p_gen = jax.nn.sigmoid(jnp.sum(pg_in * params["w_pg"], 1, keepdims=True) + params["b_pg"])
    out = jnp.concatenate([h_t, c_t], 1) @ params["w_o1"] + params["b_o1"]
    logits = out @ params["w_o2"] + params["b_o2"]
    vocab_dist = jax.nn.softmax(logits, axis=1)
    vocab_dist_ = jnp.concatenate([p_gen * vocab_dist, extra_zeros], 1)
    attn_dist_ = (1.0 - p_gen) * attn
    final = jax.vmap(lambda vd, ix, ad: vd.at[ix].add(ad))(
        vocab_dist_, enc_batch_extend_vocab, attn_dist_)
    return final, h_t, c_cell, c_t, attn, p_gen


if __name__ == "__main__":
    B, TK, H, E, V = 2, 8, HIDDEN_DIM, EMB_DIM, VOCAB_SIZE
    n_extra = 4
    key = jax.random.PRNGKey(0)
    kp, k1, k2, k3, k4, k5, k6, k7 = jax.random.split(key, 8)

    params = init_params(kp)
    y_t_1 = jax.random.randint(k1, (B,), 0, V)
    h0 = 0.1 * jax.random.normal(k2, (1, B, H), jnp.float32)
    c0 = 0.1 * jax.random.normal(k3, (1, B, H), jnp.float32)
    encoder_outputs = jax.random.normal(k4, (B, TK, 2 * H), jnp.float32)
    encoder_feature = jax.random.normal(k5, (B * TK, 2 * H), jnp.float32)
    enc_padding_mask = jnp.ones((B, TK), jnp.float32).at[1, 6:].set(0.0)
    c_t_1 = 0.1 * jax.random.normal(k6, (B, 2 * H), jnp.float32)
    extra_zeros = jnp.zeros((B, n_extra), jnp.float32)
    enc_batch_extend_vocab = jax.random.randint(k7, (B, TK), 0, V + n_extra)
    coverage = None
    step = 1

    final_dist, s_t, c_t, attn_dist, p_gen, cov = decoder_forward(
        params, y_t_1, (h0, c0), encoder_outputs, encoder_feature,
        enc_padding_mask, c_t_1, extra_zeros, enc_batch_extend_vocab,
        coverage, step)
    jax.block_until_ready(final_dist)

    rf, rh, rc, rct, rattn, rpg = reference_forward(
        params, y_t_1, (h0, c0), encoder_outputs, encoder_feature,
        enc_padding_mask, c_t_1, extra_zeros, enc_batch_extend_vocab)

    import numpy as np
    # LSTM state: no approximate reciprocal on this path -> tight tolerance.
    np.testing.assert_allclose(np.asarray(s_t[0][0]), np.asarray(rh), rtol=1e-4, atol=1e-4)
    np.testing.assert_allclose(np.asarray(s_t[1][0]), np.asarray(rc), rtol=1e-4, atol=1e-4)
    # Quantities downstream of pl.reciprocal(approx=True): slightly looser tolerance.
    tol = dict(rtol=2e-2, atol=1e-4)
    np.testing.assert_allclose(np.asarray(attn_dist), np.asarray(rattn), **tol)
    np.testing.assert_allclose(np.asarray(c_t), np.asarray(rct), **tol)
    np.testing.assert_allclose(np.asarray(p_gen), np.asarray(rpg), **tol)
    np.testing.assert_allclose(np.asarray(final_dist), np.asarray(rf), **tol)

    print("KERNEL_OK")
</pallas_src>

<mosaic_0001>
module attributes {stable_mosaic.version = 11 : i64} {
  func.func @decoder_kernel(%arg0: memref<8xi32, #tpu.memory_space<smem>>, %arg1: memref<8x64xf32, #tpu.memory_space<vmem>>, %arg2: memref<8x32xf32, #tpu.memory_space<vmem>>, %arg3: memref<8x32xf32, #tpu.memory_space<vmem>>, %arg4: memref<8x8x64xf32, #tpu.memory_space<vmem>>, %arg5: memref<8x8x64xf32, #tpu.memory_space<vmem>>, %arg6: memref<8x8xf32, #tpu.memory_space<vmem>>, %arg7: memref<8x8xi32, #tpu.memory_space<vmem>>, %arg8: memref<64x16xf32, #tpu.memory_space<vmem>>, %arg9: memref<64x16xf32, #tpu.memory_space<vmem>>, %arg10: memref<1x16xf32, #tpu.memory_space<vmem>>, %arg11: memref<16x128xf32, #tpu.memory_space<vmem>>, %arg12: memref<32x128xf32, #tpu.memory_space<vmem>>, %arg13: memref<1x128xf32, #tpu.memory_space<vmem>>, %arg14: memref<32x64xf32, #tpu.memory_space<vmem>>, %arg15: memref<32x64xf32, #tpu.memory_space<vmem>>, %arg16: memref<1x64xf32, #tpu.memory_space<vmem>>, %arg17: memref<1x64xf32, #tpu.memory_space<vmem>>, %arg18: memref<1x64xf32, #tpu.memory_space<vmem>>, %arg19: memref<1x32xf32, #tpu.memory_space<vmem>>, %arg20: memref<1x32xf32, #tpu.memory_space<vmem>>, %arg21: memref<1x16xf32, #tpu.memory_space<vmem>>, %arg22: memref<1x1xf32, #tpu.memory_space<vmem>>, %arg23: memref<32x32xf32, #tpu.memory_space<vmem>>, %arg24: memref<64x32xf32, #tpu.memory_space<vmem>>, %arg25: memref<32x64xf32, #tpu.memory_space<vmem>>, %arg26: memref<1x64xf32, #tpu.memory_space<vmem>>, %arg27: memref<8x128xf32, #tpu.memory_space<vmem>>, %arg28: memref<8x256xf32, #tpu.memory_space<vmem>>, %arg29: memref<8x16xf32, #tpu.memory_space<vmem>>) attributes {dimension_semantics = [], scalar_prefetch = 0 : i64, scratch_operands = 1 : i64, tpu.core_type = #tpu.core_type<tc>} {
    %c0 = arith.constant 0 : index
    %0 = memref.load %arg0[%c0] : memref<8xi32, #tpu.memory_space<smem>>
    %1 = arith.index_cast %0 : i32 to index
    %c0_0 = arith.constant 0 : index
    %2 = vector.load %arg8[%1, %c0_0] : memref<64x16xf32, #tpu.memory_space<vmem>>, vector<1x16xf32>
    %c0_1 = arith.constant 0 : index
    %c0_2 = arith.constant 0 : index
    %3 = vector.load %arg29[%c0_1, %c0_2] : memref<8x16xf32, #tpu.memory_space<vmem>>, vector<1x16xf32>
    tpu.vector_store %arg29[%c0_1, %c0_2], %2 {strides = array<i32>} : memref<8x16xf32, #tpu.memory_space<vmem>>, vector<1x16xf32>,
    %c1 = arith.constant 1 : index
    %4 = memref.load %arg0[%c1] : memref<8xi32, #tpu.memory_space<smem>>
    %5 = arith.index_cast %4 : i32 to index
    %c0_3 = arith.constant 0 : index
    %6 = vector.load %arg8[%5, %c0_3] : memref<64x16xf32, #tpu.memory_space<vmem>>, vector<1x16xf32>
    %c1_4 = arith.constant 1 : index
    %c0_5 = arith.constant 0 : index
    %7 = vector.load %arg29[%c1_4, %c0_5] : memref<8x16xf32, #tpu.memory_space<vmem>>, vector<1x16xf32>
    tpu.vector_store %arg29[%c1_4, %c0_5], %6 {strides = array<i32>} : memref<8x16xf32, #tpu.memory_space<vmem>>, vector<1x16xf32>,
    %c2 = arith.constant 2 : index
    %8 = memref.load %arg0[%c2] : memref<8xi32, #tpu.memory_space<smem>>
    %9 = arith.index_cast %8 : i32 to index
    %c0_6 = arith.constant 0 : index
    %10 = vector.load %arg8[%9, %c0_6] : memref<64x16xf32, #tpu.memory_space<vmem>>, vector<1x16xf32>
    %c2_7 = arith.constant 2 : index
    %c0_8 = arith.constant 0 : index
    %11 = vector.load %arg29[%c2_7, %c0_8] : memref<8x16xf32, #tpu.memory_space<vmem>>, vector<1x16xf32>
    tpu.vector_store %arg29[%c2_7, %c0_8], %10 {strides = array<i32>} : memref<8x16xf32, #tpu.memory_space<vmem>>, vector<1x16xf32>,
    %c3 = arith.constant 3 : index
    %12 = memref.load %arg0[%c3] : memref<8xi32, #tpu.memory_space<smem>>
    %13 = arith.index_cast %12 : i32 to index
    %c0_9 = arith.constant 0 : index
    %14 = vector.load %arg8[%13, %c0_9] : memref<64x16xf32, #tpu.memory_space<vmem>>, vector<1x16xf32>
    %c3_10 = arith.constant 3 : index
    %c0_11 = arith.constant 0 : index
    %15 = vector.load %arg29[%c3_10, %c0_11] : memref<8x16xf32, #tpu.memory_space<vmem>>, vector<1x16xf32>
    tpu.vector_store %arg29[%c3_10, %c0_11], %14 {strides = array<i32>} : memref<8x16xf32, #tpu.memory_space<vmem>>, vector<1x16xf32>,
    %c4 = arith.constant 4 : index
    %16 = memref.load %arg0[%c4] : memref<8xi32, #tpu.memory_space<smem>>
    %17 = arith.index_cast %16 : i32 to index
    %c0_12 = arith.constant 0 : index
    %18 = vector.load %arg8[%17, %c0_12] : memref<64x16xf32, #tpu.memory_space<vmem>>, vector<1x16xf32>
    %c4_13 = arith.constant 4 : index
    %c0_14 = arith.constant 0 : index
    %19 = vector.load %arg29[%c4_13, %c0_14] : memref<8x16xf32, #tpu.memory_space<vmem>>, vector<1x16xf32>
    tpu.vector_store %arg29[%c4_13, %c0_14], %18 {strides = array<i32>} : memref<8x16xf32, #tpu.memory_space<vmem>>, vector<1x16xf32>,
    %c5 = arith.constant 5 : index
    %20 = memref.load %arg0[%c5] : memref<8xi32, #tpu.memory_space<smem>>
    %21 = arith.index_cast %20 : i32 to index
    %c0_15 = arith.constant 0 : index
    %22 = vector.load %arg8[%21, %c0_15] : memref<64x16xf32, #tpu.memory_space<vmem>>, vector<1x16xf32>
    %c5_16 = arith.constant 5 : index
    %c0_17 = arith.constant 0 : index
    %23 = vector.load %arg29[%c5_16, %c0_17] : memref<8x16xf32, #tpu.memory_space<vmem>>, vector<1x16xf32>
    tpu.vector_store %arg29[%c5_16, %c0_17], %22 {strides = array<i32>} : memref<8x16xf32, #tpu.memory_space<vmem>>, vector<1x16xf32>,
    %c6 = arith.constant 6 : index
    %24 = memref.load %arg0[%c6] : memref<8xi32, #tpu.memory_space<smem>>
    %25 = arith.index_cast %24 : i32 to index
    %c0_18 = arith.constant 0 : index
    %26 = vector.load %arg8[%25, %c0_18] : memref<64x16xf32, #tpu.memory_space<vmem>>, vector<1x16xf32>
    %c6_19 = arith.constant 6 : index
    %c0_20 = arith.constant 0 : index
    %27 = vector.load %arg29[%c6_19, %c0_20] : memref<8x16xf32, #tpu.memory_space<vmem>>, vector<1x16xf32>
    tpu.vector_store %arg29[%c6_19, %c0_20], %26 {strides = array<i32>} : memref<8x16xf32, #tpu.memory_space<vmem>>, vector<1x16xf32>,
    %c7 = arith.constant 7 : index
    %28 = memref.load %arg0[%c7] : memref<8xi32, #tpu.memory_space<smem>>
    %29 = arith.index_cast %28 : i32 to index
    %c0_21 = arith.constant 0 : index
    %30 = vector.load %arg8[%29, %c0_21] : memref<64x16xf32, #tpu.memory_space<vmem>>, vector<1x16xf32>
    %c7_22 = arith.constant 7 : index
    %c0_23 = arith.constant 0 : index
    %31 = vector.load %arg29[%c7_22, %c0_23] : memref<8x16xf32, #tpu.memory_space<vmem>>, vector<1x16xf32>
    tpu.vector_store %arg29[%c7_22, %c0_23], %30 {strides = array<i32>} : memref<8x16xf32, #tpu.memory_space<vmem>>, vector<1x16xf32>,
    %c0_24 = arith.constant 0 : index
    %c0_25 = arith.constant 0 : index
    %32 = vector.load %arg1[%c0_24, %c0_25] : memref<8x64xf32, #tpu.memory_space<vmem>>, vector<8x64xf32>
    %c0_26 = arith.constant 0 : index
    %c0_27 = arith.constant 0 : index
    %33 = vector.load %arg9[%c0_26, %c0_27] : memref<64x16xf32, #tpu.memory_space<vmem>>, vector<64x16xf32>
    %cst = arith.constant dense<0.000000e+00> : vector<8x16xf32>
    %34 = tpu.matmul %32, %33, %cst {dimension_numbers = #tpu.dot_dimension_numbers<[1], [0], [0], [1], [0, 0, 1, 1], [], []>} : vector<8x64xf32>, vector<64x16xf32>, vector<8x16xf32> -> vector<8x16xf32>
    %c0_28 = arith.constant 0 : index
    %c0_29 = arith.constant 0 : index
    %35 = vector.load %arg29[%c0_28, %c0_29] : memref<8x16xf32, #tpu.memory_space<vmem>>, vector<8x16xf32>
    %36 = arith.addf %34, %35 : vector<8x16xf32>
    %c0_30 = arith.constant 0 : index
    %c0_31 = arith.constant 0 : index
    %37 = vector.load %arg10[%c0_30, %c0_31] : memref<1x16xf32, #tpu.memory_space<vmem>>, vector<1x16xf32>
    %38 = vector.broadcast %37 : vector<1x16xf32> to vector<8x16xf32>
    %39 = arith.addf %36, %38 : vector<8x16xf32>
    %c0_32 = arith.constant 0 : index
    %c0_33 = arith.constant 0 : index
    %40 = vector.load %arg11[%c0_32, %c0_33] : memref<16x128xf32, #tpu.memory_space<vmem>>, vector<16x128xf32>
    %cst_34 = arith.constant dense<0.000000e+00> : vector<8x128xf32>
    %41 = tpu.matmul %39, %40, %cst_34 {dimension_numbers = #tpu.dot_dimension_numbers<[1], [0], [0], [1], [0, 0, 1, 1], [], []>} : vector<8x16xf32>, vector<16x128xf32>, vector<8x128xf32> -> vector<8x128xf32>
    %c0_35 = arith.constant 0 : index
    %c0_36 = arith.constant 0 : index
    %42 = vector.load %arg2[%c0_35, %c0_36] : memref<8x32xf32, #tpu.memory_space<vmem>>, vector<8x32xf32>
    %c0_37 = arith.constant 0 : index
    %c0_38 = arith.constant 0 : index
    %43 = vector.load %arg12[%c0_37, %c0_38] : memref<32x128xf32, #tpu.memory_space<vmem>>, vector<32x128xf32>
    %cst_39 = arith.constant dense<0.000000e+00> : vector<8x128xf32>
    %44 = tpu.matmul %42, %43, %cst_39 {dimension_numbers = #tpu.dot_dimension_numbers<[1], [0], [0], [1], [0, 0, 1, 1], [], []>} : vector<8x32xf32>, vector<32x128xf32>, vector<8x128xf32> -> vector<8x128xf32>
    %45 = arith.addf %41, %44 : vector<8x128xf32>
    %c0_40 = arith.constant 0 : index
    %c0_41 = arith.constant 0 : index
    %46 = vector.load %arg13[%c0_40, %c0_41] : memref<1x128xf32, #tpu.memory_space<vmem>>, vector<1x128xf32>
    %47 = vector.broadcast %46 : vector<1x128xf32> to vector<8x128xf32>
    %48 = arith.addf %45, %47 : vector<8x128xf32>
    %49 = vector.extract_strided_slice %48 {offsets = [0, 0], sizes = [8, 32], strides = [1, 1]} : vector<8x128xf32> to vector<8x32xf32>
    %50 = arith.negf %49 : vector<8x32xf32>
    %51 = math.exp %50 : vector<8x32xf32>
    %cst_42 = arith.constant 1.000000e+00 : f32
    %52 = vector.broadcast %cst_42 : f32 to vector<8x32xf32>
    %53 = arith.addf %52, %51 : vector<8x32xf32>
    %54 = arith.divf %52, %53 : vector<8x32xf32>
    %55 = vector.extract_strided_slice %48 {offsets = [0, 32], sizes = [8, 32], strides = [1, 1]} : vector<8x128xf32> to vector<8x32xf32>
    %56 = arith.negf %55 : vector<8x32xf32>
    %57 = math.exp %56 : vector<8x32xf32>
    %cst_43 = arith.constant 1.000000e+00 : f32
    %58 = vector.broadcast %cst_43 : f32 to vector<8x32xf32>
    %59 = arith.addf %58, %57 : vector<8x32xf32>
    %60 = arith.divf %58, %59 : vector<8x32xf32>
    %61 = vector.extract_strided_slice %48 {offsets = [0, 64], sizes = [8, 32], strides = [1, 1]} : vector<8x128xf32> to vector<8x32xf32>
    %62 = math.tanh %61 : vector<8x32xf32>
    %63 = vector.extract_strided_slice %48 {offsets = [0, 96], sizes = [8, 32], strides = [1, 1]} : vector<8x128xf32> to vector<8x32xf32>
    %64 = arith.negf %63 : vector<8x32xf32>
    %65 = math.exp %64 : vector<8x32xf32>
    %cst_44 = arith.constant 1.000000e+00 : f32
    %66 = vector.broadcast %cst_44 : f32 to vector<8x32xf32>
    %67 = arith.addf %66, %65 : vector<8x32xf32>
    %68 = arith.divf %66, %67 : vector<8x32xf32>
    %c0_45 = arith.constant 0 : index
    %c0_46 = arith.constant 0 : index
    %69 = vector.load %arg3[%c0_45, %c0_46] : memref<8x32xf32, #tpu.memory_space<vmem>>, vector<8x32xf32>
    %70 = arith.mulf %60, %69 : vector<8x32xf32>
    %71 = arith.mulf %54, %62 : vector<8x32xf32>
    %72 = arith.addf %70, %71 : vector<8x32xf32>
    %73 = math.tanh %72 : vector<8x32xf32>
    %74 = arith.mulf %68, %73 : vector<8x32xf32>
    %c0_47 = arith.constant 0 : index
    %c0_48 = arith.constant 0 : index
    %75 = vector.load %arg14[%c0_47, %c0_48] : memref<32x64xf32, #tpu.memory_space<vmem>>, vector<32x64xf32>
    %cst_49 = arith.constant dense<0.000000e+00> : vector<8x64xf32>
    %76 = tpu.matmul %74, %75, %cst_49 {dimension_numbers = #tpu.dot_dimension_numbers<[1], [0], [0], [1], [0, 0, 1, 1], [], []>} : vector<8x32xf32>, vector<32x64xf32>, vector<8x64xf32> -> vector<8x64xf32>
    %c0_50 = arith.constant 0 : index
    %c0_51 = arith.constant 0 : index
    %77 = vector.load %arg15[%c0_50, %c0_51] : memref<32x64xf32, #tpu.memory_space<vmem>>, vector<32x64xf32>
    %cst_52 = arith.constant dense<0.000000e+00> : vector<8x64xf32>
    %78 = tpu.matmul %72, %77, %cst_52 {dimension_numbers = #tpu.dot_dimension_numbers<[1], [0], [0], [1], [0, 0, 1, 1], [], []>} : vector<8x32xf32>, vector<32x64xf32>, vector<8x64xf32> -> vector<8x64xf32>
    %79 = arith.addf %76, %78 : vector<8x64xf32>
    %c0_53 = arith.constant 0 : index
    %c0_54 = arith.constant 0 : index
    %80 = vector.load %arg16[%c0_53, %c0_54] : memref<1x64xf32, #tpu.memory_space<vmem>>, vector<1x64xf32>
    %81 = vector.broadcast %80 : vector<1x64xf32> to vector<8x64xf32>
    %82 = arith.addf %79, %81 : vector<8x64xf32>
    %c0_55 = arith.constant 0 : index
    %c0_56 = arith.constant 0 : index
    %c0_57 = arith.constant 0 : index
    %83 = vector.load %arg5[%c0_55, %c0_56, %c0_57] : memref<8x8x64xf32, #tpu.memory_space<vmem>>, vector<8x8x64xf32>
    %84 = vector.shape_cast %82 : vector<8x64xf32> to vector<8x1x64xf32>
    %85 = vector.broadcast %84 : vector<8x1x64xf32> to vector<8x8x64xf32>
    %86 = arith.addf %83, %85 : vector<8x8x64xf32>
    %87 = math.tanh %86 : vector<8x8x64xf32>
    %c0_58 = arith.constant 0 : index
    %c0_59 = arith.constant 0 : index
    %88 = vector.load %arg17[%c0_58, %c0_59] : memref<1x64xf32, #tpu.memory_space<vmem>>, vector<1x64xf32>
    %89 = vector.shape_cast %88 : vector<1x64xf32> to vector<1x1x64xf32>
    %90 = vector.broadcast %89 : vector<1x1x64xf32> to vector<8x8x64xf32>
    %91 = arith.mulf %87, %90 : vector<8x8x64xf32>
    %cst_60 = arith.constant dense<0.000000e+00> : vector<8x8xf32>
    %92 = vector.multi_reduction <add>, %91, %cst_60 [2] : vector<8x8x64xf32> to vector<8x8xf32>
    %cst_61 = arith.constant dense<0xFF800000> : vector<8xf32>
    %93 = vector.multi_reduction <maximumf>, %92, %cst_61 [1] : vector<8x8xf32> to vector<8xf32>
    %94 = vector.shape_cast %93 : vector<8xf32> to vector<8x1xf32>
    %95 = vector.broadcast %94 : vector<8x1xf32> to vector<8x8xf32>
    %96 = arith.subf %92, %95 : vector<8x8xf32>
    %97 = math.exp %96 : vector<8x8xf32>
    %cst_62 = arith.constant dense<0.000000e+00> : vector<8xf32>
    %98 = vector.multi_reduction <add>, %97, %cst_62 [1] : vector<8x8xf32> to vector<8xf32>
    %99 = vector.shape_cast %98 : vector<8xf32> to vector<8x1xf32>
    %100 = tpu.reciprocal %99 {approx = true} : vector<8x1xf32> -> vector<8x1xf32>
    %101 = vector.broadcast %100 : vector<8x1xf32> to vector<8x8xf32>
    %102 = arith.mulf %97, %101 : vector<8x8xf32>
    %c0_63 = arith.constant 0 : index
    %c0_64 = arith.constant 0 : index
    %103 = vector.load %arg6[%c0_63, %c0_64] : memref<8x8xf32, #tpu.memory_space<vmem>>, vector<8x8xf32>
    %104 = arith.mulf %102, %103 : vector<8x8xf32>
    %cst_65 = arith.constant dense<0.000000e+00> : vector<8xf32>
    %105 = vector.multi_reduction <add>, %104, %cst_65 [1] : vector<8x8xf32> to vector<8xf32>
    %106 = vector.shape_cast %105 : vector<8xf32> to vector<8x1xf32>
    %107 = tpu.reciprocal %106 {approx = true} : vector<8x1xf32> -> vector<8x1xf32>
    %108 = vector.broadcast %107 : vector<8x1xf32> to vector<8x8xf32>
    %109 = arith.mulf %104, %108 : vector<8x8xf32>
    %110 = vector.shape_cast %109 : vector<8x8xf32> to vector<8x1x8xf32>
    %c0_66 = arith.constant 0 : index
    %c0_67 = arith.constant 0 : index
    %c0_68 = arith.constant 0 : index
    %111 = vector.load %arg4[%c0_66, %c0_67, %c0_68] : memref<8x8x64xf32, #tpu.memory_space<vmem>>, vector<8x8x64xf32>
    "tpu.trace_start"() <{level = 10 : i32, message = "bqt,btd->bqd"}> : () -> ()
    %cst_69 = arith.constant dense<0.000000e+00> : vector<8x1x64xf32>
    %112 = tpu.matmul %110, %111, %cst_69 {dimension_numbers = #tpu.dot_dimension_numbers<[2], [1], [1], [2], [0, 0, 0, 1, 1, 2], [0], [0]>} : vector<8x1x8xf32>, vector<8x8x64xf32>, vector<8x1x64xf32> -> vector<8x1x64xf32>
    "tpu.trace_stop"() : () -> ()
    %113 = vector.shape_cast %112 : vector<8x1x64xf32> to vector<8x64xf32>
    %c0_70 = arith.constant 0 : index
    %c0_71 = arith.constant 0 : index
    %114 = vector.load %arg18[%c0_70, %c0_71] : memref<1x64xf32, #tpu.memory_space<vmem>>, vector<1x64xf32>
    %115 = vector.broadcast %114 : vector<1x64xf32> to vector<8x64xf32>
    %116 = arith.mulf %113, %115 : vector<8x64xf32>
    %cst_72 = arith.constant dense<0.000000e+00> : vector<8xf32>
    %117 = vector.multi_reduction <add>, %116, %cst_72 [1] : vector<8x64xf32> to vector<8xf32>
    %118 = vector.shape_cast %117 : vector<8xf32> to vector<8x1xf32>
    %c0_73 = arith.constant 0 : index
    %c0_74 = arith.constant 0 : index
    %119 = vector.load %arg19[%c0_73, %c0_74] : memref<1x32xf32, #tpu.memory_space<vmem>>, vector<1x32xf32>
    %120 = vector.broadcast %119 : vector<1x32xf32> to vector<8x32xf32>
    %121 = arith.mulf %74, %120 : vector<8x32xf32>
    %cst_75 = arith.constant dense<0.000000e+00> : vector<8xf32>
    %122 = vector.multi_reduction <add>, %121, %cst_75 [1] : vector<8x32xf32> to vector<8xf32>
    %123 = vector.shape_cast %122 : vector<8xf32> to vector<8x1xf32>
    %124 = arith.addf %118, %123 : vector<8x1xf32>
    %c0_76 = arith.constant 0 : index
    %c0_77 = arith.constant 0 : index
    %125 = vector.load %arg20[%c0_76, %c0_77] : memref<1x32xf32, #tpu.memory_space<vmem>>, vector<1x32xf32>
    %126 = vector.broadcast %125 : vector<1x32xf32> to vector<8x32xf32>
    %127 = arith.mulf %72, %126 : vector<8x32xf32>
    %cst_78 = arith.constant dense<0.000000e+00> : vector<8xf32>
    %128 = vector.multi_reduction <add>, %127, %cst_78 [1] : vector<8x32xf32> to vector<8xf32>
    %129 = vector.shape_cast %128 : vector<8xf32> to vector<8x1xf32>
    %130 = arith.addf %124, %129 : vector<8x1xf32>
    %c0_79 = arith.constant 0 : index
    %c0_80 = arith.constant 0 : index
    %131 = vector.load %arg21[%c0_79, %c0_80] : memref<1x16xf32, #tpu.memory_space<vmem>>, vector<1x16xf32>
    %132 = vector.broadcast %131 : vector<1x16xf32> to vector<8x16xf32>
    %133 = arith.mulf %39, %132 : vector<8x16xf32>
    %cst_81 = arith.constant dense<0.000000e+00> : vector<8xf32>
    %134 = vector.multi_reduction <add>, %133, %cst_81 [1] : vector<8x16xf32> to vector<8xf32>
    %135 = vector.shape_cast %134 : vector<8xf32> to vector<8x1xf32>
    %136 = arith.addf %130, %135 : vector<8x1xf32>
    %c0_82 = arith.constant 0 : index
    %c0_83 = arith.constant 0 : index
    %137 = vector.load %arg22[%c0_82, %c0_83] : memref<1x1xf32, #tpu.memory_space<vmem>>, vector<1x1xf32>
    %138 = vector.broadcast %137 : vector<1x1xf32> to vector<8x1xf32>
    %139 = arith.addf %136, %138 : vector<8x1xf32>
    %140 = arith.negf %139 : vector<8x1xf32>
    %141 = math.exp %140 : vector<8x1xf32>
    %cst_84 = arith.constant 1.000000e+00 : f32
    %142 = vector.broadcast %cst_84 : f32 to vector<8x1xf32>
    %143 = arith.addf %142, %141 : vector<8x1xf32>
    %144 = arith.divf %142, %143 : vector<8x1xf32>
    %c0_85 = arith.constant 0 : index
    %c0_86 = arith.constant 0 : index
    %145 = vector.load %arg23[%c0_85, %c0_86] : memref<32x32xf32, #tpu.memory_space<vmem>>, vector<32x32xf32>
    %cst_87 = arith.constant dense<0.000000e+00> : vector<8x32xf32>
    %146 = tpu.matmul %74, %145, %cst_87 {dimension_numbers = #tpu.dot_dimension_numbers<[1], [0], [0], [1], [0, 0, 1, 1], [], []>} : vector<8x32xf32>, vector<32x32xf32>, vector<8x32xf32> -> vector<8x32xf32>
    %c0_88 = arith.constant 0 : index
    %c0_89 = arith.constant 0 : index
    %147 = vector.load %arg24[%c0_88, %c0_89] : memref<64x32xf32, #tpu.memory_space<vmem>>, vector<64x32xf32>
    %cst_90 = arith.constant dense<0.000000e+00> : vector<8x32xf32>
    %148 = tpu.matmul %113, %147, %cst_90 {dimension_numbers = #tpu.dot_dimension_numbers<[1], [0], [0], [1], [0, 0, 1, 1], [], []>} : vector<8x64xf32>, vector<64x32xf32>, vector<8x32xf32> -> vector<8x32xf32>
    %149 = arith.addf %146, %148 : vector<8x32xf32>
    %c0_91 = arith.constant 0 : index
    %c0_92 = arith.constant 0 : index
    %150 = vector.load %arg25[%c0_91, %c0_92] : memref<32x64xf32, #tpu.memory_space<vmem>>, vector<32x64xf32>
    %cst_93 = arith.constant dense<0.000000e+00> : vector<8x64xf32>
    %151 = tpu.matmul %149, %150, %cst_93 {dimension_numbers = #tpu.dot_dimension_numbers<[1], [0], [0], [1], [0, 0, 1, 1], [], []>} : vector<8x32xf32>, vector<32x64xf32>, vector<8x64xf32> -> vector<8x64xf32>
    %c0_94 = arith.constant 0 : index
    %c0_95 = arith.constant 0 : index
    %152 = vector.load %arg26[%c0_94, %c0_95] : memref<1x64xf32, #tpu.memory_space<vmem>>, vector<1x64xf32>
    %153 = vector.broadcast %152 : vector<1x64xf32> to vector<8x64xf32>
    %154 = arith.addf %151, %153 : vector<8x64xf32>
    %cst_96 = arith.constant dense<0xFF800000> : vector<8xf32>
    %155 = vector.multi_reduction <maximumf>, %154, %cst_96 [1] : vector<8x64xf32> to vector<8xf32>
    %156 = vector.shape_cast %155 : vector<8xf32> to vector<8x1xf32>
    %157 = vector.broadcast %156 : vector<8x1xf32> to vector<8x64xf32>
    %158 = arith.subf %154, %157 : vector<8x64xf32>
    %159 = math.exp %158 : vector<8x64xf32>
    %cst_97 = arith.constant dense<0.000000e+00> : vector<8xf32>
    %160 = vector.multi_reduction <add>, %159, %cst_97 [1] : vector<8x64xf32> to vector<8xf32>
    %161 = vector.shape_cast %160 : vector<8xf32> to vector<8x1xf32>
    %162 = tpu.reciprocal %161 {approx = true} : vector<8x1xf32> -> vector<8x1xf32>
    %163 = vector.broadcast %162 : vector<8x1xf32> to vector<8x64xf32>
    %164 = arith.mulf %159, %163 : vector<8x64xf32>
    %165 = vector.broadcast %144 : vector<8x1xf32> to vector<8x64xf32>
    %166 = arith.mulf %165, %164 : vector<8x64xf32>
    %cst_98 = arith.constant 1.000000e+00 : f32
    %167 = vector.broadcast %cst_98 : f32 to vector<8x1xf32>
    %168 = arith.subf %167, %144 : vector<8x1xf32>
    %169 = vector.broadcast %168 : vector<8x1xf32> to vector<8x8xf32>
    %170 = arith.mulf %169, %109 : vector<8x8xf32>
    %cst_99 = arith.constant 0.000000e+00 : f32
    %171 = vector.broadcast %cst_99 : f32 to vector<8x64xf32>
    %172 = tpu.concatenate %166, %171 in 1 : vector<8x64xf32>, vector<8x64xf32> -> vector<8x128xf32>
    %173 = tpu.iota {dimensions = array<i32: 2>} : vector<8x8x128xi32>
    %c0_100 = arith.constant 0 : index
    %c0_101 = arith.constant 0 : index
    %174 = vector.load %arg7[%c0_100, %c0_101] : memref<8x8xi32, #tpu.memory_space<vmem>>, vector<8x8xi32>
    %175 = vector.shape_cast %174 : vector<8x8xi32> to vector<8x8x1xi32>
    %176 = vector.broadcast %175 : vector<8x8x1xi32> to vector<8x8x128xi32>
    %177 = arith.cmpi eq, %173, %176 : vector<8x8x128xi32>
    %178 = arith.extui %177 : vector<8x8x128xi1> to vector<8x8x128xi32>
    %179 = arith.sitofp %178 : vector<8x8x128xi32> to vector<8x8x128xf32>
    %180 = vector.shape_cast %170 : vector<8x8xf32> to vector<8x1x8xf32>
    "tpu.trace_start"() <{level = 10 : i32, message = "bqt,btv->bqv"}> : () -> ()
    %cst_102 = arith.constant dense<0.000000e+00> : vector<8x1x128xf32>
    %181 = tpu.matmul %180, %179, %cst_102 {dimension_numbers = #tpu.dot_dimension_numbers<[2], [1], [1], [2], [0, 0, 0, 1, 1, 2], [0], [0]>} : vector<8x1x8xf32>, vector<8x8x128xf32>, vector<8x1x128xf32> -> vector<8x1x128xf32>
    "tpu.trace_stop"() : () -> ()
    %182 = vector.shape_cast %181 : vector<8x1x128xf32> to vector<8x128xf32>
    %183 = arith.addf %172, %182 : vector<8x128xf32>
    %c0_103 = arith.constant 0 : index
    %c0_104 = arith.constant 0 : index
    %184 = vector.load %arg27[%c0_103, %c0_104] : memref<8x128xf32, #tpu.memory_space<vmem>>, vector<8x128xf32>
    tpu.vector_store %arg27[%c0_103, %c0_104], %183 {strides = array<i32>} : memref<8x128xf32, #tpu.memory_space<vmem>>, vector<8x128xf32>,
    %cst_105 = arith.constant 0.000000e+00 : f32
    %185 = vector.broadcast %cst_105 : f32 to vector<8x119xf32>
    %186 = tpu.concatenate %74, %72, %113, %109, %144, %185 in 1 : vector<8x32xf32>, vector<8x32xf32>, vector<8x64xf32>, vector<8x8xf32>, vector<8x1xf32>, vector<8x119xf32> -> vector<8x256xf32>
    %c0_106 = arith.constant 0 : index
    %c0_107 = arith.constant 0 : index
    %187 = vector.load %arg28[%c0_106, %c0_107] : memref<8x256xf32, #tpu.memory_space<vmem>>, vector<8x256xf32>
    tpu.vector_store %arg28[%c0_106, %c0_107], %186 {strides = array<i32>} : memref<8x256xf32, #tpu.memory_space<vmem>>, vector<8x256xf32>,
    return
  }
}

</mosaic_0001>

<bundles_post_ra>
// kernel: tpu_custom_call.1
= control target key start
LH: loop header
LB: loop body
LE: loop exit
PB: predicated region body
PF: predicated region fallthrough
CT: control target
= control target key end

     0   :  { %s4772_s0 = inlined_call_operand.hbm [shape: s32[8], index: 0, kind: input, shape index: {}]   ;;  %s4773_s1 = inlined_call_operand.hbm [shape: f32[8,64], index: 1, kind: input, shape index: {}]   ;;  %s4774_s2 = inlined_call_operand.hbm [shape: f32[8,32], index: 2, kind: input, shape index: {}]   ;;  %s4775_s3 = inlined_call_operand.hbm [shape: f32[8,32], index: 3, kind: input, shape index: {}]   ;;  %s4776_s4 = inlined_call_operand.vmem [shape: f32[8,8,64], index: 4, kind: input, shape index: {}]   ;;  %s4777_s5 = inlined_call_operand.vmem [shape: f32[8,8,64], index: 5, kind: input, shape index: {}]   ;;  %s4778_s6 = inlined_call_operand.hbm [shape: f32[8,8], index: 6, kind: input, shape index: {}]   ;;  %s4779_s7 = inlined_call_operand.hbm [shape: s32[8,8], index: 7, kind: input, shape index: {}]   ;;  %s4780_s8 = inlined_call_operand.vmem [shape: f32[64,16], index: 8, kind: input, shape index: {}]   ;;  %s4781_s9 = inlined_call_operand.vmem [shape: f32[64,16], index: 9, kind: input, shape index: {}]   ;;  %s4782_s10 = inlined_call_operand.hbm [shape: f32[1,16], index: 10, kind: input, shape index: {}]   ;;  %s4783_s11 = inlined_call_operand.hbm [shape: f32[16,128], index: 11, kind: input, shape index: {}]   ;;  %s4784_s12 = inlined_call_operand.vmem [shape: f32[32,128], index: 12, kind: input, shape index: {}]   ;;  %s4785_s13 = inlined_call_operand.hbm [shape: f32[1,128], index: 13, kind: input, shape index: {}]   ;;  %s4786_s14 = inlined_call_operand.vmem [shape: f32[32,64], index: 14, kind: input, shape index: {}]   ;;  %s4787_s15 = inlined_call_operand.vmem [shape: f32[32,64], index: 15, kind: input, shape index: {}]   ;;  %s4788_s16 = inlined_call_operand.hbm [shape: f32[1,64], index: 16, kind: input, shape index: {}]   ;;  %s4789_s17 = inlined_call_operand.vmem [shape: f32[1,64], index: 17, kind: input, shape index: {}]   ;;  %s4790_s18 = inlined_call_operand.vmem [shape: f32[1,64], index: 18, kind: input, shape index: {}]   ;;  %s4791_s19 = inlined_call_operand.vmem [shape: f32[1,32], index: 19, kind: input, shape index: {}]   ;;  %s4792_s20 = inlined_call_operand.vmem [shape: f32[1,32], index: 20, kind: input, shape index: {}]   ;;  %s4793_s21 = inlined_call_operand.vmem [shape: f32[1,16], index: 21, kind: input, shape index: {}]   ;;  %s4794_s22 = inlined_call_operand.<no memory space> [shape: f32[1,1], index: 22, kind: input, shape index: {}]   ;;  %s4795_s23 = inlined_call_operand.vmem [shape: f32[32,32], index: 23, kind: input, shape index: {}]   ;;  %s4796_s24 = inlined_call_operand.vmem [shape: f32[64,32], index: 24, kind: input, shape index: {}]   ;;  %s4797_s25 = inlined_call_operand.vmem [shape: f32[32,64], index: 25, kind: input, shape index: {}]   ;;  %s4798_s26 = inlined_call_operand.vmem [shape: f32[1,64], index: 26, kind: input, shape index: {}]   ;;  %s4799_s27 = inlined_call_operand.hbm [shape: f32[8,128], index: 27, kind: output, shape index: {0}]   ;;  %s4800_s28 = inlined_call_operand.hbm [shape: f32[8,256], index: 28, kind: output, shape index: {1}]  }
   0x1   :  { %4817 = sst [smem:[#allocation32_spill]] %s4772_s0  ;;  %v34_v0 = vstv %s4794_s22 }
   0x2   :  { %4818 = sst [smem:[#allocation33_spill]] %s4773_s1  ;;  %35 = vst [vmem:[#allocation3] sm:$0x1] %v34_v0 }
   0x3   :  { %4819 = sst [smem:[#allocation34_spill]] %s4774_s2 }
   0x4   :  { %4820 = sst [smem:[#allocation35_spill]] %s4775_s3 }
   0x5   :  { %4821 = sst [smem:[#allocation36_spill]] %s4776_s4 }
   0x6   :  { %4822 = sst [smem:[#allocation37_spill]] %s4777_s5 }
   0x7   :  { %4823 = sst [smem:[#allocation38_spill]] %s4778_s6 }
   0x8   :  { %4824 = sst [smem:[#allocation39_spill]] %s4779_s7 }
   0x9   :  { %4825 = sst [smem:[#allocation40_spill]] %s4780_s8 }
   0xa   :  { %4826 = sst [smem:[#allocation41_spill]] %s4781_s9 }
   0xb   :  { %4827 = sst [smem:[#allocation42_spill]] %s4782_s10 }
   0xc   :  { %4828 = sst [smem:[#allocation43_spill]] %s4783_s11 }
   0xd   :  { %4829 = sst [smem:[#allocation44_spill]] %s4784_s12 }
   0xe   :  { %4830 = sst [smem:[#allocation45_spill]] %s4799_s27 }
   0xf   :  { %4831 = sst [smem:[#allocation46_spill]] %s4800_s28 }
  0x10   :  { %36 = vsyncpa [#allocation7], 0 }
  0x11   :  { %37 = vsyncpa [#allocation5], 0 }
  0x12   :  { %38 = vsyncpa [#allocation10], 0 }
  0x13   :  { %39 = vsyncpa [#allocation13], 0 }
  0x14   :  { %40 = vsyncpa [#allocation16], 0 }
  0x15   :  { %41 = vsyncpa [#allocation19], 0 }
  0x16   :  { %42 = vsyncpa [#allocation6], 0 }
  0x17   :  { %43 = vsyncpa [#allocation23], 0  ;;  %s3848_s9 = smov [#allocation9]   ;;  %s3849_s3 = smov [#allocation12]  }
  0x18   :  { %s68_s30 = sshll.u32 %s3848_s9, 4  ;;  %s92_s6 = sshll.u32 %s3849_s3, 4  ;;  %s69_s30 = int_to_ptr.vmem [resolvable:$true] %s68_s30  ;;  %s93_s6 = int_to_ptr.vmem [resolvable:$true] %s92_s6 }
  0x19   :  { %s4832_s11 = sld [smem:[#allocation34_spill]] }
  0x1f   :  { %s3580_s29 = scalar_lea.hbm %s4832_s11, 128 }
  0x20   :  { %p3581_p0 = scmp.ne.s32.totalorder %s4832_s11, %s3580_s29  ;;  %p3584_p1 = scmp.lt.u32.totalorder %s3580_s29, %s4832_s11 }
  0x22   :  { %p3586_p2 = pnand %p3584_p1, %p3581_p0 }
  0x24   :  { %3589 = shalt.err (!%p3586_p2)
}
  0x25   :  { %s3590_s1 = scalar_lea.vmem %s69_s30, 128  ;;  %p3595_p4 = scmp.lt.s32.totalorder %s69_s30, %s69_s30 }
  0x26   :  { %p3591_p3 = scmp.ne.s32.totalorder %s69_s30, %s3590_s1  ;;  %p3596_p5 = scmp.lt.s32.totalorder %s3590_s1, %s3590_s1 }
  0x28   :  { %p3597_p6 = por %p3596_p5, %p3595_p4 }
  0x2a   :  { %p3598_p7 = pnand %p3597_p6, %p3591_p3 }
  0x2c   :  { %3601 = shalt.err (!%p3598_p7)
}
  0x2d   :  { %71 = dma.hbm_to_vmem [thread:$0]  %s4832_s11, 128, %s69_s30, [#allocation10]  }
  0x2e   :  { %s4833_s3 = sld [smem:[#allocation38_spill]] }
  0x34   :  { %s3602_s10 = scalar_lea.hbm %s4833_s3, 128 }
  0x35   :  { %p3603_p8 = scmp.ne.s32.totalorder %s4833_s3, %s3602_s10  ;;  %p3606_p9 = scmp.lt.u32.totalorder %s3602_s10, %s4833_s3 }
  0x37   :  { %p3608_p10 = pnand %p3606_p9, %p3603_p8 }
  0x39   :  { %3611 = shalt.err (!%p3608_p10)
}
  0x3a   :  { %s3612_s7 = scalar_lea.vmem %s93_s6, 128  ;;  %p3617_p12 = scmp.lt.s32.totalorder %s93_s6, %s93_s6 }
  0x3b   :  { %p3613_p11 = scmp.ne.s32.totalorder %s93_s6, %s3612_s7  ;;  %p3618_p13 = scmp.lt.s32.totalorder %s3612_s7, %s3612_s7 }
  0x3d   :  { %p3619_p0 = por %p3618_p13, %p3617_p12 }
  0x3f   :  { %p3620_p1 = pnand %p3619_p0, %p3613_p11 }
  0x41   :  { %3623 = shalt.err (!%p3620_p1)
}
  0x42   :  { %95 = dma.hbm_to_vmem [thread:$0]  %s4833_s3, 128, %s93_s6, [#allocation13]  }
  0x43   :  { %s3850_s12 = smov [#allocation15]   ;;  %s3851_s4 = smov [#allocation18]  }
  0x44   :  { %s116_s1 = sshll.u32 %s3850_s12, 4  ;;  %s140_s8 = sshll.u32 %s3851_s4, 4  ;;  %s117_s1 = int_to_ptr.vmem [resolvable:$true] %s116_s1  ;;  %s141_s8 = int_to_ptr.vmem [resolvable:$true] %s140_s8 }
  0x45   :  { %s4834_s10 = sld [smem:[#allocation42_spill]] }
  0x4b   :  { %s3624_s0 = scalar_lea.hbm %s4834_s10, 16 }
  0x4c   :  { %p3625_p2 = scmp.ne.s32.totalorder %s4834_s10, %s3624_s0  ;;  %p3628_p3 = scmp.lt.u32.totalorder %s3624_s0, %s4834_s10 }
  0x4e   :  { %p3630_p4 = pnand %p3628_p3, %p3625_p2 }
  0x50   :  { %3633 = shalt.err (!%p3630_p4)
}
  0x51   :  { %s3634_s6 = scalar_lea.vmem %s117_s1, 16  ;;  %s3638_s3 = scalar_lea.vmem %s117_s1, 32 }
  0x52   :  { %p3635_p5 = scmp.ne.s32.totalorder %s117_s1, %s3634_s6  ;;  %p3639_p6 = scmp.lt.s32.totalorder %s117_s1, %s117_s1 }
  0x53   :  { %p3640_p7 = scmp.lt.s32.totalorder %s3638_s3, %s3634_s6 }
  0x55   :  { %p3641_p8 = por %p3640_p7, %p3639_p6 }
  0x57   :  { %p3642_p9 = pnand %p3641_p8, %p3635_p5 }
  0x59   :  { %3645 = shalt.err (!%p3642_p9)
}
  0x5a   :  { %119 = dma.hbm_to_vmem [thread:$0]  %s4834_s10, 16, %s117_s1, [#allocation16]  }
  0x5b   :  { %s3646_s5 = scalar_lea.hbm %s4785_s13, 16 }
  0x5c   :  { %p3647_p10 = scmp.ne.s32.totalorder %s4785_s13, %s3646_s5  ;;  %p3650_p11 = scmp.lt.u32.totalorder %s3646_s5, %s4785_s13 }
  0x5e   :  { %p3652_p12 = pnand %p3650_p11, %p3647_p10 }
  0x60   :  { %3655 = shalt.err (!%p3652_p12)
}
  0x61   :  { %s3656_s2 = scalar_lea.vmem %s141_s8, 16  ;;  %s3660_s7 = scalar_lea.vmem %s141_s8, 32 }
  0x62   :  { %p3657_p13 = scmp.ne.s32.totalorder %s141_s8, %s3656_s2  ;;  %p3661_p0 = scmp.lt.s32.totalorder %s141_s8, %s141_s8 }
  0x63   :  { %p3662_p1 = scmp.lt.s32.totalorder %s3660_s7, %s3656_s2 }
  0x65   :  { %p3663_p2 = por %p3662_p1, %p3661_p0 }
  0x67   :  { %p3664_p3 = pnand %p3663_p2, %p3657_p13 }
  0x69   :  { %3667 = shalt.err (!%p3664_p3)
}
  0x6a   :  { %143 = dma.hbm_to_vmem [thread:$0]  %s4785_s13, 16, %s141_s8, [#allocation19]  }
  0x6b   :  { %s4835_s30 = sld [smem:[#allocation32_spill]] }
  0x71   :  { %s3668_s11 = scalar_lea.hbm %s4835_s30, 16 }
  0x72   :  { %p3669_p4 = scmp.ne.s32.totalorder %s4835_s30, %s3668_s11  ;;  %p3672_p5 = scmp.lt.u32.totalorder %s3668_s11, %s4835_s30 }
  0x74   :  { %p3674_p6 = pnand %p3672_p5, %p3669_p4 }
  0x76   :  { %3677 = shalt.err (!%p3674_p6)
}
  0x77   :  { %s3852_s0 = smov [#allocation4]   ;;  %s3853_s13 = smov [#allocation8]  }
  0x78   :  { %51 = dma.hbm_to_smem %s4835_s30, 16, %s3852_s0, [#allocation7]  }
  0x79   :  { %s58_s8 = sshll.u32 %s3853_s13, 4  ;;  %s3854_s2 = smov [#allocation11]   ;;  %s59_s8 = int_to_ptr.vmem [resolvable:$true] %s58_s8 }
  0x7a   :  { %s78_s7 = sshll.u32 %s3854_s2, 4  ;;  %s4836_s6 = sld [smem:[#allocation33_spill]]  ;;  %s79_s7 = int_to_ptr.vmem [resolvable:$true] %s78_s7 }
  0x80   :  { %s3678_s3 = scalar_lea.hbm %s4836_s6, 128 }
  0x81   :  { %p3679_p7 = scmp.ne.s32.totalorder %s4836_s6, %s3678_s3  ;;  %p3682_p8 = scmp.lt.u32.totalorder %s3678_s3, %s4836_s6 }
  0x83   :  { %p3684_p9 = pnand %p3682_p8, %p3679_p7 }
  0x85   :  { %3687 = shalt.err (!%p3684_p9)
}
  0x86   :  { %s3688_s30 = scalar_lea.vmem %s59_s8, 128  ;;  %p3693_p11 = scmp.lt.s32.totalorder %s59_s8, %s59_s8 }
  0x87   :  { %p3689_p10 = scmp.ne.s32.totalorder %s59_s8, %s3688_s30  ;;  %p3694_p12 = scmp.lt.s32.totalorder %s3688_s30, %s3688_s30 }
  0x89   :  { %p3695_p13 = por %p3694_p12, %p3693_p11 }
  0x8b   :  { %p3696_p0 = pnand %p3695_p13, %p3689_p10 }
  0x8d   :  { %3699 = shalt.err (!%p3696_p0)
}
  0x8e   :  { %61 = dma.hbm_to_vmem [thread:$0]  %s4836_s6, 128, %s59_s8, [#allocation5]  }
  0x8f   :  { %s4837_s13 = sld [smem:[#allocation35_spill]] }
  0x95   :  { %s3700_s2 = scalar_lea.hbm %s4837_s13, 128 }
  0x96   :  { %p3701_p1 = scmp.ne.s32.totalorder %s4837_s13, %s3700_s2  ;;  %p3704_p2 = scmp.lt.u32.totalorder %s3700_s2, %s4837_s13 }
  0x98   :  { %p3706_p3 = pnand %p3704_p2, %p3701_p1 }
  0x9a   :  { %3709 = shalt.err (!%p3706_p3)
}
  0x9b   :  { %s3710_s4 = scalar_lea.vmem %s79_s7, 128  ;;  %p3715_p5 = scmp.lt.s32.totalorder %s79_s7, %s79_s7 }
  0x9c   :  { %p3711_p4 = scmp.ne.s32.totalorder %s79_s7, %s3710_s4  ;;  %p3716_p6 = scmp.lt.s32.totalorder %s3710_s4, %s3710_s4 }
  0x9e   :  { %p3717_p7 = por %p3716_p6, %p3715_p5 }
  0xa0   :  { %p3718_p8 = pnand %p3717_p7, %p3711_p4 }
  0xa2   :  { %3721 = shalt.err (!%p3718_p8)
}
  0xa3   :  { %81 = dma.hbm_to_vmem [thread:$0]  %s4837_s13, 128, %s79_s7, [#allocation10]  }
  0xa4   :  { %s3855_s11 = smov [#allocation14]   ;;  %s3856_s30 = smov [#allocation17]  }
  0xa5   :  { %s102_s5 = sshll.u32 %s3855_s11, 4  ;;  %s125_s9 = sshll.u32 %s3856_s30, 4  ;;  %s103_s5 = int_to_ptr.vmem [resolvable:$true] %s102_s5  ;;  %s126_s9 = int_to_ptr.vmem [resolvable:$true] %s125_s9 }
  0xa6   :  { %s4838_s29 = sld [smem:[#allocation39_spill]] }
  0xac   :  { %s3722_s2 = scalar_lea.hbm %s4838_s29, 128 }
  0xad   :  { %p3723_p9 = scmp.ne.s32.totalorder %s4838_s29, %s3722_s2  ;;  %p3726_p10 = scmp.lt.u32.totalorder %s3722_s2, %s4838_s29 }
  0xaf   :  { %p3728_p11 = pnand %p3726_p10, %p3723_p9 }
  0xb1   :  { %3731 = shalt.err (!%p3728_p11)
}
  0xb2   :  { %s3732_s7 = scalar_lea.vmem %s103_s5, 128  ;;  %p3737_p13 = scmp.lt.s32.totalorder %s103_s5, %s103_s5 }
  0xb3   :  { %p3733_p12 = scmp.ne.s32.totalorder %s103_s5, %s3732_s7  ;;  %p3738_p0 = scmp.lt.s32.totalorder %s3732_s7, %s3732_s7 }
  0xb5   :  { %p3739_p1 = por %p3738_p0, %p3737_p13 }
  0xb7   :  { %p3740_p2 = pnand %p3739_p1, %p3733_p12 }
  0xb9   :  { %3743 = shalt.err (!%p3740_p2)
}
  0xba   :  { %105 = dma.hbm_to_vmem [thread:$0]  %s4838_s29, 128, %s103_s5, [#allocation13]  }
  0xbb   :  { %s4839_s11 = sld [smem:[#allocation43_spill]] }
  0xc1   :  { %s3744_s30 = scalar_lea.hbm %s4839_s11, 256 }
  0xc2   :  { %p3745_p3 = scmp.ne.s32.totalorder %s4839_s11, %s3744_s30  ;;  %p3748_p4 = scmp.lt.u32.totalorder %s3744_s30, %s4839_s11 }
  0xc4   :  { %p3750_p5 = pnand %p3748_p4, %p3745_p3 }
  0xc6   :  { %3753 = shalt.err (!%p3750_p5)
}
  0xc7   :  { %s3754_s10 = scalar_lea.vmem %s126_s9, 256  ;;  %p3759_p7 = scmp.lt.s32.totalorder %s126_s9, %s126_s9 }
  0xc8   :  { %p3755_p6 = scmp.ne.s32.totalorder %s126_s9, %s3754_s10  ;;  %p3760_p8 = scmp.lt.s32.totalorder %s3754_s10, %s3754_s10 }
  0xca   :  { %p3761_p9 = por %p3760_p8, %p3759_p7 }
  0xcc   :  { %p3762_p10 = pnand %p3761_p9, %p3755_p6 }
  0xce   :  { %3765 = shalt.err (!%p3762_p10)
}
  0xcf   :  { %s3857_s5 = smov 128   ;;  %s4814_s29 = smov 8  }
  0xd0   :  { %131 = dma.hbm_to_vmem [thread:$0]  %s4839_s11, 256, %s126_s9, [#allocation16], %s3857_s5, %s3857_s5, %s4814_s29  }
  0xd1   :  { %s3859_s7 = smov [#allocation20]   ;;  %s3766_s6 = scalar_lea.hbm %s4788_s16, 16 }
  0xd2   :  { %s154_s13 = sshll.u32 %s3859_s7, 4  ;;  %p3767_p11 = scmp.ne.s32.totalorder %s4788_s16, %s3766_s6  ;;  %s155_s13 = int_to_ptr.vmem [resolvable:$true] %s154_s13 }
  0xd3   :  { %p3770_p12 = scmp.lt.u32.totalorder %s3766_s6, %s4788_s16 }
  0xd5   :  { %p3772_p13 = pnand %p3770_p12, %p3767_p11 }
  0xd7   :  { %3775 = shalt.err (!%p3772_p13)
}
  0xd8   :  { %s3776_s1 = scalar_lea.vmem %s155_s13, 16  ;;  %s3780_s9 = scalar_lea.vmem %s155_s13, 32 }
  0xd9   :  { %p3777_p0 = scmp.ne.s32.totalorder %s155_s13, %s3776_s1  ;;  %p3781_p1 = scmp.lt.s32.totalorder %s155_s13, %s155_s13 }
  0xda   :  { %p3782_p2 = scmp.lt.s32.totalorder %s3780_s9, %s3776_s1 }
  0xdc   :  { %p3783_p3 = por %p3782_p2, %p3781_p1 }
  0xde   :  { %p3784_p4 = pnand %p3783_p3, %p3777_p0 }
  0xe0   :  { %3787 = shalt.err (!%p3784_p4)
}
  0xe1   :  { %157 = dma.hbm_to_vmem [thread:$0]  %s4788_s16, 16, %s155_s13, [#allocation19]  }
  0xe2   :  { %3832 = dma.done.wait [#allocation7], 16  }
  0xe3   :  { %3833 = vsyncadd [#allocation7], 4294967280 }
  0xe4   :  { %3834 = dma.done.wait [#allocation5], 128  }
  0xe5   :  { %3835 = vsyncadd [#allocation5], 4294967168 }
  0xe6   :  { %3836 = dma.done.wait [#allocation10], 256  }
  0xe7   :  { %3837 = vsyncadd [#allocation10], 4294967040 }
  0xe8   :  { %3838 = dma.done.wait [#allocation13], 256  }
  0xe9   :  { %3839 = vsyncadd [#allocation13], 4294967040 }
  0xea   :  { %3840 = dma.done.wait [#allocation16], 272  }
  0xeb   :  { %3841 = vsyncadd [#allocation16], 4294967024 }
  0xec   :  { %3842 = dma.done.wait [#allocation19], 32  }
  0xed   :  { %3843 = vsyncadd [#allocation19], 4294967264 }
  0xee   :  { %208 = sfence }
  0xef   :  { %s4840_s12 = sld [smem:[#allocation41_spill]]  ;;  %v3860_v4 = vmov 0.0|0.0   ;;  %vm3861_vm0 = vmmov 0   ;;  %v3862_v7 = vmov 0.0   ;;  %s4155_s30 = sld [smem:[#allocation4]]  ;;  %vm212_vm1 = vcmask 122880  }
  0xf0   :  { %3444 = vmatprep.subr.bf16.mxu0 %v3860_v4  ;;  %3280 = vmatprep.mubr.msk.f32.mxu0 %vm3861_vm0, %v3862_v7  ;;  %s4163_s2 = sld [smem:[#allocation4 + $0x1]]  ;;  %s4841_s11 = sld [smem:[#allocation44_spill]]  ;;  %v242_v29 = vld [vmem:[#allocation8] sm:$0xff]  ;;  %vm252_vm2 = vcmask 523264   ;;  %v336_v30 = vld [vmem:[#allocation9] sm:$0xff]  ;;  %vm341_vm3 = vcmask 261120  }
  0xf1   :  { %3456 = vmatprep.subr.bf16.mxu1 %v3860_v4  ;;  %3291 = vmatprep.mubr.msk.f32.mxu1 %vm3861_vm0, %v3862_v7  ;;  %s3128_s4 = sld [smem:[#allocation4 + $0x2]]  ;;  %s3129_s0 = sld [smem:[#allocation4 + $0x3]]  ;;  %v334_v31 = vld [vmem:[#allocation17] sm:$0xff]  ;;  %v335_v32 = vld [vmem:[#allocation17 + $0x8] sm:$0xff]  ;;  %v3135_v36 = vld [vmem:[#allocation15] ss:$0 sm:$0xff] }
  0xf2   :  { %s3130_s22 = sld [smem:[#allocation4 + $0x4]]  ;;  %s4181_s1 = sld [smem:[#allocation4 + $0x5]]  ;;  %v3463_v33 = vpack.c.bf16 %v335_v32, %v334_v31  ;;  %vm415_vm4 = vcmask 130048   ;;  %v3155_v39 = vld [vmem:[%s4793_s21] ss:$0 sm:$0xff]  ;;  %v531_v59 = vld [vmem:[%s4787_s15 + $0x8] sm:$0xff] }
  0xf3   :  { %s4183_s9 = sld [smem:[#allocation4 + $0x6]]  ;;  %s4185_s10 = sld [smem:[#allocation4 + $0x7]]  ;;  %v3138_v46 = vld [vmem:[#allocation18] ss:$0 sm:$0xff]  ;;  %v504_v51 = vld [vmem:[#allocation11] sm:$0xff]  ;;  %v532_v60 = vld [vmem:[%s4787_s15 + $0x10] sm:$0xff] }
  0xf4   :  { %s4842_s7 = sld [smem:[#allocation40_spill]]  ;;  %s3864_s21 = smov 32   ;;  %v530_v58 = vld [vmem:[%s4787_s15] sm:$0xff]  ;;  %v533_v62 = vld [vmem:[%s4787_s15 + $0x18] sm:$0xff]  ;;  %vm887_vm5 = vcmask 1041409   ;;  %vm889_vm6 = vcmask 1042434  }
  0xf5   :  { %v243_v1 = vld [vmem:[%s4840_s12] sm:$0xff]  ;;  %v244_v2 = vld [vmem:[%s4840_s12 + $0x8] sm:$0xff]  ;;  %v245_v3 = vld [vmem:[%s4840_s12 + $0x10] sm:$0xff]  ;;  %v3466_v61 = vpack.c.bf16 %v531_v59, %v530_v58  ;;  %v3469_v63 = vpack.c.bf16 %v533_v62, %v532_v60  ;;  %vm891_vm7 = vcmask 1043459   ;;  %vm893_vm8 = vcmask 1044484  }
  0xf6   :  { %v3445_v5 = vpack.c.bf16 %v244_v2, %v243_v1  ;;  %v246_v6 = vld [vmem:[%s4840_s12 + $0x18] sm:$0xff]  ;;  %v247_v8 = vld [vmem:[%s4840_s12 + $0x20] sm:$0xff]  ;;  %v338_v11 = vld [vmem:[%s4841_s11 + $0x8] sm:$0xff]  ;;  %vm895_vm9 = vcmask 1045509   ;;  %vm897_vm10 = vcmask 1046534   ;;  %vm899_vm11 = vcmask 1047559  }
  0xf7   :  { %v3448_v9 = vpack.c.bf16 %v246_v6, %v245_v3  ;;  %v337_v10 = vld [vmem:[%s4841_s11] sm:$0xff]  ;;  %v339_v12 = vld [vmem:[%s4841_s11 + $0x10] sm:$0xff]  ;;  %v248_v13 = vld [vmem:[%s4840_s12 + $0x28] sm:$0xff]  ;;  %vm902_vm12 = vcmask 64512  }
  0xf8   :  { %3446 = vmatpush3.bf16.msra.mxu0 %v3445_v5  ;;  %v3457_v14 = vpack.c.bf16 %v338_v11, %v337_v10  ;;  %v340_v15 = vld [vmem:[%s4841_s11 + $0x18] sm:$0xff]  ;;  %v3451_v17 = vpack.c.bf16 %v248_v13, %v247_v8  ;;  %v249_v18 = vld [vmem:[%s4840_s12 + $0x30] sm:$0xff]  ;;  %v526_v5 = vld [vmem:[%s4786_s14] sm:$0xff] }
  0xf9   :  { %3447 = vmatprep.subr.bf16.mxu0 %v3860_v4  ;;  %v3460_v16 = vpack.c.bf16 %v340_v15, %v339_v12  ;;  %v250_v19 = vld [vmem:[%s4840_s12 + $0x38] sm:$0xff]  ;;  %v527_v6 = vld [vmem:[%s4786_s14 + $0x8] sm:$0xff]  ;;  %v528_v8 = vld [vmem:[%s4786_s14 + $0x10] sm:$0xff] }
  0xfa   :  { %3458 = vmatpush3.bf16.msra.mxu1 %v3457_v14  ;;  %s210_s11 = scalar_lea.vmem %s4842_s7, %s4155_s30  ;;  %s215_s28 = scalar_lea.vmem %s4842_s7, %s4163_s2  ;;  %v3454_v23 = vpack.c.bf16 %v250_v19, %v249_v18  ;;  %v529_v10 = vld [vmem:[%s4786_s14 + $0x18] sm:$0xff]  ;;  %v3866_v19 = vmov 1966171168  }
  0xfb   :  { %3459 = vmatprep.subr.bf16.mxu1 %v3860_v4  ;;  %v211_v20 = vld [vmem:[%s210_s11] sm:$0x1]  ;;  %s219_s3 = scalar_lea.vmem %s4842_s7, %s3128_s4  ;;  %s223_s11 = scalar_lea.vmem %s4842_s7, %s3129_s0  ;;  %v3475_v11 = vpack.c.bf16 %v529_v10, %v528_v8 }
  0xfc   :  { %3449 = vmatpush3.bf16.msra.mxu0 %v3448_v9  ;;  %213 = vst.msk [vmem:[#allocation2] sm:$0x1] %vm212_vm1, %v211_v20  ;;  %v216_v21 = vld [vmem:[%s215_s28] sm:$0x1]  ;;  %s227_s29 = scalar_lea.vmem %s4842_s7, %s3130_s22  ;;  %s231_s4 = scalar_lea.vmem %s4842_s7, %s4181_s1  ;;  %v3472_v9 = vpack.c.bf16 %v527_v6, %v526_v5  ;;  %v703_v20 = vunpack.c.l.s4 %v3866_v19 }
  0xfd   :  { %3450 = vmatprep.subr.bf16.mxu0 %v3860_v4  ;;  %217 = vst.msk [vmem:[#allocation2 + $0x1] sm:$0x1] %vm212_vm1, %v216_v21  ;;  %v220_v22 = vld [vmem:[%s219_s3] sm:$0x1]  ;;  %s235_s30 = scalar_lea.vmem %s4842_s7, %s4183_s9  ;;  %s239_s5 = scalar_lea.vmem %s4842_s7, %s4185_s10  ;;  %v705_v21 = vlaneseq }
  0xfe   :  { %3461 = vmatpush3.bf16.msra.mxu1 %v3460_v16  ;;  %221 = vst.msk [vmem:[#allocation2 + $0x2] sm:$0x1] %vm212_vm1, %v220_v22  ;;  %v224_v24 = vld [vmem:[%s223_s11] sm:$0x1]  ;;  %s3863_s10 = smov 64   ;;  %s3865_s28 = smov 96   ;;  %v704_v22 = vunpack.c.0.s8 %v703_v20 }
  0xff   :  { %v228_v25 = vld [vmem:[%s227_s29] sm:$0x1]  ;;  %3462 = vmatprep.subr.bf16.mxu1 %v3860_v4  ;;  %225 = vst.msk [vmem:[#allocation2 + $0x3] sm:$0x1] %vm212_vm1, %v224_v24  ;;  %s4843_s1 = sld [smem:[#allocation37_spill]] }
 0x100   :  { %3452 = vmatpush3.bf16.msra.mxu0 %v3451_v17  ;;  %229 = vst.msk [vmem:[#allocation2 + $0x4] sm:$0x1] %vm212_vm1, %v228_v25  ;;  %v232_v26 = vld [vmem:[%s231_s4] sm:$0x1]  ;;  %v3142_v25 = vld [vmem:[#allocation20] ss:$0 sm:$0xff] }
 0x101   :  { %3453 = vmatprep.subr.bf16.mxu0 %v3860_v4  ;;  %v236_v27 = vld [vmem:[%s235_s30] sm:$0x1]  ;;  %233 = vst.msk [vmem:[#allocation2 + $0x5] sm:$0x1] %vm212_vm1, %v232_v26  ;;  %3292 = vmatmul.mubr.msk.f32.vlgmr.msra.gmra.mrb[0].mxu1 %vm341_vm3, %v336_v30 }
 0x102   :  { %237 = vst.msk [vmem:[#allocation2 + $0x6] sm:$0x1] %vm212_vm1, %v236_v27  ;;  %v240_v28 = vld [vmem:[%s239_s5] sm:$0x1]  ;;  %3298 = vmatprep.mubr.msk.f32.mxu1 %vm3861_vm0, %v3862_v7  ;;  %3464 = vmatpush3.bf16.msra.mxu1 %v3463_v33 }
 0x103   :  { %241 = vst.msk [vmem:[#allocation2 + $0x7] sm:$0x1] %vm212_vm1, %v240_v28  ;;  %3465 = vmatprep.subr.bf16.mxu1 %v3860_v4  ;;  %v3143_v6 = vld [vmem:[%s4789_s17] ss:$0 sm:$0xff] }
 0x104   :  { %3455 = vmatpush3.bf16.msra.mxu0 %v3454_v23  ;;  %v4300_v23 = vshrl.u32 %v705_v21, 7 }
 0x105   :  { %3471 = vmatprep.subr.bf16.mxu0 %v3860_v4  ;;  %v698_v58 = vld [vmem:[%s4843_s1 + $0x30] sm:$0xff]  ;;  %v699_v5 = vld [vmem:[%s4843_s1 + $0x38] sm:$0xff] }
 0x106   :  { %v4303_v27 = vsub.s32 %v704_v22, %v4300_v23  ;;  %v4307_v32 = vsub.s32 0, %v4300_v23 }
 0x107   :  { %3281 = vmatmul.mubr.msk.f32.vlgmr.msra.gmra.mrb[0].mxu0 %vm252_vm2, %v242_v29 }
 0x108   :  { %3320 = vmatprep.mubr.msk.f32.mxu0 %vm3861_vm0, %v3862_v7  ;;  %3473 = vmatpush3.bf16.msra.mxu0 %v3472_v9 }
 0x109   :  { %3474 = vmatprep.subr.bf16.mxu0 %v3860_v4 }
 0x10a   :  { %v251_v34 = vld [vmem:[#allocation2] sm:$0xff] }
 0x10c   :  { %3476 = vmatpush3.bf16.msra.mxu0 %v3475_v11 }
 0x10d   :  { %3328 = vmatprep.subr.mxu0 %v3862_v7 }
 0x1d4   :  { %v411_v43 = vpop.f32.mrb[0].mxu1 }
 0x1d5   :  { %v3293_v44 = vpop.f32.mrb[1].mxu1 }
 0x1d6   :  { %v694_v44 = vld [vmem:[%s4843_s1 + $0x10] sm:$0xff] }
 0x1da   :  { %v322_v35 = vpop.f32.mrb[0].mxu0 }
 0x1db   :  { %v323_v37 = vadd.f32 %v322_v35, %v251_v34  ;;  %v3282_v38 = vpop.f32.mrb[1].mxu0 }
 0x1dd   :  { %v333_v40 = vadd.f32 %v3135_v36, %v323_v37  ;;  %v692_v36 = vld [vmem:[%s4843_s1] sm:$0xff] }
 0x1df   :  { %3299 = vmatmul.mubr.msk.f32.vlgmr.msra.gmra.mrb[2].mxu1 %vm415_vm4, %v333_v40  ;;  %v2027_v41 = vmul.f32 %v3155_v39, %v333_v40 }
 0x1e0   :  { %3309 = vmatprep.mubr.msk.f32.mxu1 %vm3861_vm0, %v3862_v7  ;;  %3467 = vmatpush3.bf16.msra.mxu1 %v3466_v61 }
 0x1e1   :  { %v4247_v42 = vsel %vm415_vm4, %v2027_v41, 0.0  ;;  %3468 = vmatprep.subr.bf16.mxu1 %v3860_v4 }
 0x1e4   :  { %3470 = vmatpush3.bf16.msra.mxu1 %v3469_v63  ;;  %v697_v63 = vld [vmem:[%s4843_s1 + $0x28] sm:$0xff] }
 0x1e5   :  { %3323 = vmatprep.subr.mxu1 %v3862_v7 }
 0x2b2   :  { %v485_v45 = vpop.f32.mrb[2].mxu1 }
 0x2b3   :  { %v486_v47 = vadd.f32 %v485_v45, %v411_v43  ;;  %v3300_v48 = vpop.f32.mrb[3].mxu1  ;;  %v693_v43 = vld [vmem:[%s4843_s1 + $0x8] sm:$0xff]  ;;  %v696_v45 = vld [vmem:[%s4843_s1 + $0x20] sm:$0xff] }
 0x2b5   :  { %v496_v49 = vadd.f32 %v3138_v46, %v486_v47 }
 0x2b7   :  { %3528 = vtanh.f32 %v496_v49  ;;  %v3139_v52 = vmul.f32 -1.442695, %v496_v49 }
 0x2b9   :  { %3530 = vpow2.f32 %v3139_v52 }
 0x2c1   :  { %v3529_v50 = vpop.eup %3528 }
 0x2c2   :  { %511 = vrot.lane.b32.xlu0 %v3529_v50, %s3863_s10 }
 0x2c3   :  { %v3531_v53 = vpop.eup %3530 }
 0x2c4   :  { %v500_v54 = vadd.f32 1.0, %v3531_v53  ;;  %v695_v53 = vld [vmem:[%s4843_s1 + $0x18] sm:$0xff]  ;;  %s4844_s1 = sld [smem:[#allocation36_spill]] }
 0x2c6   :  { %506 = vrot.lane.b32.xlu0 %v504_v51, %s3864_s21  ;;  %3532 = vrcp.f32 %v500_v54 }
 0x2d0   :  { %v3533_v55 = vpop.eup %3532 }
 0x334   :  { %v512_v56 = vpop.permute.xlu0 %511 }
 0x335   :  { %v514_v57 = vmul.f32 %v3533_v55, %v512_v56 }
 0x337   :  { %516 = vrot.lane.b32.xlu1 %v514_v57, %s3864_s21 }
 0x338   :  { %v507_v0 = vpop.permute.xlu0 %506 }
 0x339   :  { %v509_v1 = vmul.f32 %v3533_v55, %v507_v0 }
 0x3a9   :  { %v517_v2 = vpop.permute.xlu1 %516 }
 0x3aa   :  { %v4266_v3 = vadd.f32 %v517_v2, %v509_v1 }
 0x3ac   :  { %3534 = vtanh.f32 %v4266_v3  ;;  %535 = vrot.lane.b32.xlu0 %v4266_v3, %s3865_s28 }
 0x3b6   :  { %v3535_v12 = vpop.eup %3534 }
 0x3b7   :  { %522 = vrot.lane.b32.xlu1 %v3535_v12, %s3863_s10 }
 0x41e   :  { %v536_v13 = vpop.permute.xlu0 %535 }
 0x41f   :  { %3310 = vmatmul.mubr.msk.f32.vlgmr.msra.gmra.mrb[4].mxu1 %vm341_vm3, %v536_v13 }
 0x420   :  { %3325 = vmatprep.mubr.msk.f32.mxu1 %vm3861_vm0, %v3862_v7 }
 0x429   :  { %v523_v14 = vpop.permute.xlu1 %522 }
 0x42a   :  { %v4289_v15 = vmul.f32 %v3533_v55, %v523_v14 }
 0x42c   :  { %610 = vrot.lane.b32.xlu1 %v4289_v15, %s3864_s21 }
 0x49e   :  { %v4293_v16 = vpop.permute.xlu1 %610 }
 0x49f   :  { %3321 = vmatmul.mubr.msk.f32.vlgmr.msra.gmra.mrb[2].mxu0 %vm341_vm3, %v4293_v16 }
 0x4a0   :  { %3330 = vmatprep.mubr.msk.f32.mxu0 %vm3861_vm0, %v3862_v7 }
 0x4f2   :  { %v605_v17 = vpop.f32.mrb[4].mxu1 }
 0x4f3   :  { %v3311_v18 = vpop.f32.mrb[5].mxu1 }
 0x572   :  { %v680_v24 = vpop.f32.mrb[2].mxu0 }
 0x573   :  { %v681_v26 = vadd.f32 %v680_v24, %v605_v17  ;;  %v3322_v28 = vpop.f32.mrb[3].mxu0 }
 0x575   :  { %v691_v29 = vadd.f32 %v3142_v25, %v681_v26 }
 0x577   :  { %v701_v30 = vcombine.high %v691_v29, %v691_v29  ;;  %v708_v31 = vrot.slane %v691_v29, %v4303_v27 }
 0x579   :  { %v715_v33 = vrot.slane %v701_v30, %v4303_v27  ;;  %v716_v34 = vcombine.high %v708_v31, %v708_v31  ;;  %v724_v35 = vrot.slane %v708_v31, %v4303_v27 }
 0x57b   :  { %v717_v37 = vcombine.high %v715_v33, %v715_v33  ;;  %v731_v38 = vrot.slane %v715_v33, %v4303_v27  ;;  %v738_v39 = vrot.slane %v716_v34, %v4303_v27  ;;  %v746_v40 = vcombine.high %v724_v35, %v724_v35 }
 0x57c   :  { %v753_v41 = vrot.slane %v724_v35, %v4307_v32 }
 0x57d   :  { %v745_v46 = vrot.slane %v717_v37, %v4303_v27  ;;  %v747_v47 = vcombine.high %v731_v38, %v731_v38  ;;  %v748_v48 = vcombine.high %v738_v39, %v738_v39  ;;  %v757_v49 = vrot.slane %v738_v39, %v4307_v32 }
 0x57e   :  { %v761_v50 = vrot.slane %v746_v40, %v4307_v32  ;;  %v769_v51 = vrot.slane %v731_v38, %v4307_v32  ;;  %v790_v52 = vadd.f32 %v753_v41, %v692_v36  ;;  %v4358_v39 = vand.u32 127, %v705_v21 }
 0x57f   :  { %v749_v54 = vcombine.high %v745_v46, %v745_v46  ;;  %v765_v55 = vrot.slane %v748_v48, %v4307_v32  ;;  %v773_v56 = vrot.slane %v745_v46, %v4307_v32  ;;  %v777_v57 = vrot.slane %v747_v47, %v4307_v32 }
 0x580   :  { %v791_v59 = vadd.f32 %v757_v49, %v693_v43  ;;  %v792_v60 = vadd.f32 %v761_v50, %v694_v44  ;;  %v794_v61 = vadd.f32 %v769_v51, %v696_v45  ;;  %3536 = vtanh.f32 %v790_v52 }
 0x581   :  { %v793_v62 = vadd.f32 %v765_v55, %v695_v53  ;;  %v796_v0 = vadd.f32 %v777_v57, %v698_v58  ;;  %v781_v1 = vrot.slane %v749_v54, %v4307_v32  ;;  %v795_v2 = vadd.f32 %v773_v56, %v697_v63 }
 0x582   :  { %3538 = vtanh.f32 %v791_v59  ;;  %v4362_v41 = vsub.s32 %v4358_v39, %v4300_v23 }
 0x583   :  { %3540 = vtanh.f32 %v792_v60  ;;  %v797_v8 = vadd.f32 %v781_v1, %v699_v5  ;;  %v3867_v1 = vmov 0   ;;  %v4384_v5 = vsub.s32 2, %v4300_v23 }
 0x584   :  { %3542 = vtanh.f32 %v794_v61  ;;  %3527 = vset.pattern.permute.xlu1 %v3867_v1  ;;  %3526 = vset.pattern.permute.xlu0 %v3867_v1 }
 0x585   :  { %3544 = vtanh.f32 %v793_v62 }
 0x586   :  { %3546 = vtanh.f32 %v796_v0 }
 0x587   :  { %3548 = vtanh.f32 %v795_v2  ;;  %v4381_v2 = vsub.s32 1, %v4300_v23 }
 0x588   :  { %3550 = vtanh.f32 %v797_v8 }
 0x58a   :  { %v3537_v9 = vpop.eup %3536 }
 0x58b   :  { %v813_v10 = vmul.f32 %v3537_v9, %v3143_v6 }
 0x58c   :  { %v3539_v11 = vpop.eup %3538 }
 0x58d   :  { %v3541_v12 = vpop.eup %3540  ;;  %v821_v13 = vsel %vm252_vm2, %v813_v10, 0.0  ;;  %v814_v14 = vmul.f32 %v3539_v11, %v3143_v6 }
 0x58e   :  { %v3543_v17 = vpop.eup %3542  ;;  %822 = vadd.xlane.f32.xlu0 %v821_v13  ;;  %v815_v18 = vmul.f32 %v3541_v12, %v3143_v6 }
 0x58f   :  { %v3545_v19 = vpop.eup %3544  ;;  %v824_v20 = vsel %vm252_vm2, %v814_v14, 0.0  ;;  %v817_v22 = vmul.f32 %v3543_v17, %v3143_v6  ;;  %v4393_v14 = vsub.s32 4, %v4300_v23 }
 0x590   :  { %v3547_v24 = vpop.eup %3546  ;;  %825 = vadd.xlane.f32.xlu1 %v824_v20  ;;  %v827_v25 = vsel %vm252_vm2, %v815_v18, 0.0  ;;  %v816_v26 = vmul.f32 %v3545_v19, %v3143_v6 }
 0x591   :  { %v3549_v28 = vpop.eup %3548  ;;  %v833_v29 = vsel %vm252_vm2, %v817_v22, 0.0  ;;  %v819_v30 = vmul.f32 %v3547_v24, %v3143_v6  ;;  %v4397_v22 = vsub.s32 5, %v4300_v23 }
 0x592   :  { %828 = vadd.xlane.f32.xlu0 %v827_v25  ;;  %v830_v31 = vsel %vm252_vm2, %v816_v26, 0.0  ;;  %v818_v33 = vmul.f32 %v3549_v28, %v3143_v6  ;;  %v3551_v34 = vpop.eup %3550  ;;  %v4401_v28 = vsub.s32 6, %v4300_v23 }
 0x593   :  { %v839_v35 = vsel %vm252_vm2, %v819_v30, 0.0  ;;  %v820_v37 = vmul.f32 %v3551_v34, %v3143_v6  ;;  %v4387_v6 = vsub.s32 3, %v4300_v23 }
 0x594   :  { %834 = vadd.xlane.f32.xlu1 %v833_v29  ;;  %v836_v36 = vsel %vm252_vm2, %v818_v33, 0.0  ;;  %v4405_v33 = vsub.s32 7, %v4300_v23 }
 0x595   :  { %v842_v38 = vsel %vm252_vm2, %v820_v37, 0.0 }
 0x596   :  { %831 = vadd.xlane.f32.xlu0 %v830_v31 }
 0x598   :  { %840 = vadd.xlane.f32.xlu1 %v839_v35 }
 0x59a   :  { %837 = vadd.xlane.f32.xlu0 %v836_v36 }
 0x59e   :  { %843 = vadd.xlane.f32.xlu0 %v842_v38 }
 0x61b   :  { %v823_v40 = vpop.xlane.xlu0 %822 }
 0x61c   :  { %v858_v46 = vrot.slane %v823_v40, %v4362_v41 }
 0x61d   :  { %v826_v43 = vpop.xlane.xlu1 %825 }
 0x61e   :  { %v862_v44 = vrot.slane %v826_v43, %v4362_v41 }
 0x61f   :  { %v829_v45 = vpop.xlane.xlu0 %828 }
 0x620   :  { %v866_v47 = vrot.slane %v829_v45, %v4362_v41  ;;  %v888_v48 = vsel %vm887_vm5, %v862_v44, %v858_v46 }
 0x621   :  { %v835_v49 = vpop.xlane.xlu1 %834 }
 0x622   :  { %v890_v51 = vsel %vm889_vm6, %v866_v47, %v888_v48  ;;  %v874_v53 = vrot.slane %v835_v49, %v4362_v41 }
 0x623   :  { %v832_v21 = vpop.xlane.xlu0 %831 }
 0x624   :  { %v870_v50 = vrot.slane %v832_v21, %v4362_v41 }
 0x625   :  { %v841_v55 = vpop.xlane.xlu1 %840 }
 0x626   :  { %v892_v52 = vsel %vm891_vm7, %v870_v50, %v890_v51  ;;  %v882_v59 = vrot.slane %v841_v55, %v4362_v41 }
 0x627   :  { %v838_v54 = vpop.xlane.xlu0 %837  ;;  %v894_v57 = vsel %vm893_vm8, %v874_v53, %v892_v52  ;;  %v1096_v52 = vld [vmem:[#allocation12] sm:$0xff] }
 0x628   :  { %v878_v56 = vrot.slane %v838_v54, %v4362_v41  ;;  %v1101_v53 = vrot.slane %v1096_v52, %v4307_v32 }
 0x62a   :  { %v896_v58 = vsel %vm895_vm9, %v878_v56, %v894_v57  ;;  %v1122_v56 = vrot.slane %v1096_v52, %v4387_v6  ;;  %v1129_v57 = vrot.slane %v1096_v52, %v4393_v14 }
 0x62b   :  { %v844_v60 = vpop.xlane.xlu0 %843  ;;  %v898_v62 = vsel %vm897_vm10, %v882_v59, %v896_v58  ;;  %v1136_v58 = vrot.slane %v1096_v52, %v4397_v22  ;;  %v1143_v59 = vrot.slane %v1096_v52, %v4401_v28 }
 0x62c   :  { %v886_v61 = vrot.slane %v844_v60, %v4362_v41 }
 0x62e   :  { %v900_v63 = vsel %vm899_vm11, %v886_v61, %v898_v62 }
 0x62f   :  { %v903_v0 = vsel %vm902_vm12, %v900_v63, -inf }
 0x630   :  { %904 = vmax.xlane.f32.xlu1 %v903_v0 }
 0x6bd   :  { %v905_v8 = vpop.xlane.xlu1 %904 }
 0x6be   :  { %v910_v9 = vrot.slane %v905_v8, %v4307_v32  ;;  %v914_v10 = vrot.slane %v905_v8, %v4381_v2  ;;  %v918_v11 = vrot.slane %v905_v8, %v4384_v5  ;;  %v922_v17 = vrot.slane %v905_v8, %v4387_v6 }
 0x6bf   :  { %v926_v24 = vrot.slane %v905_v8, %v4393_v14  ;;  %v930_v29 = vrot.slane %v905_v8, %v4397_v22  ;;  %v934_v34 = vrot.slane %v905_v8, %v4401_v28 }
 0x6c0   :  { %v947_v12 = vsub.f32 %v823_v40, %v910_v9  ;;  %v948_v13 = vsub.f32 %v826_v43, %v914_v10  ;;  %v949_v18 = vsub.f32 %v829_v45, %v918_v11  ;;  %v950_v25 = vsub.f32 %v832_v21, %v922_v17 }
 0x6c1   :  { %v951_v30 = vsub.f32 %v835_v49, %v926_v24  ;;  %v952_v35 = vsub.f32 %v838_v54, %v930_v29  ;;  %v938_v40 = vrot.slane %v905_v8, %v4405_v33  ;;  %v953_v43 = vsub.f32 %v841_v55, %v934_v34 }
 0x6c2   :  { %v955_v19 = vmul.f32 1.442695, %v947_v12  ;;  %v957_v20 = vmul.f32 1.442695, %v948_v13  ;;  %v959_v26 = vmul.f32 1.442695, %v949_v18  ;;  %v1108_v54 = vrot.slane %v1096_v52, %v4381_v2 }
 0x6c3   :  { %v961_v31 = vmul.f32 1.442695, %v950_v25  ;;  %v963_v36 = vmul.f32 1.442695, %v951_v30  ;;  %v965_v44 = vmul.f32 1.442695, %v952_v35  ;;  %v954_v45 = vsub.f32 %v844_v60, %v938_v40 }
 0x6c4   :  { %3552 = vpow2.f32 %v955_v19  ;;  %v967_v46 = vmul.f32 1.442695, %v953_v43  ;;  %v1115_v55 = vrot.slane %v1096_v52, %v4384_v5  ;;  %v1150_v60 = vrot.slane %v1096_v52, %v4405_v33 }
 0x6c5   :  { %3554 = vpow2.f32 %v957_v20  ;;  %v969_v48 = vmul.f32 1.442695, %v954_v45 }
 0x6c6   :  { %3556 = vpow2.f32 %v959_v26 }
 0x6c7   :  { %3558 = vpow2.f32 %v961_v31 }
 0x6c8   :  { %3560 = vpow2.f32 %v963_v36 }
 0x6c9   :  { %3562 = vpow2.f32 %v965_v44 }
 0x6ca   :  { %3564 = vpow2.f32 %v967_v46 }
 0x6cb   :  { %3566 = vpow2.f32 %v969_v48 }
 0x6ce   :  { %v4408_v37 = vpop.eup %3552 }
 0x6cf   :  { %v4410_v38 = vpop.eup %3554  ;;  %980 = vperm.xlu0 %3526, %v4408_v37  }
 0x6d0   :  { %983 = vperm.xlu1 %3527, %v4410_v38   ;;  %v4415_v23 = vpop.eup %3556 }
 0x6d1   :  { %v4418_v47 = vpop.eup %3558 }
 0x6d2   :  { %v4421_v49 = vpop.eup %3560 }
 0x6d3   :  { %v4424_v21 = vpop.eup %3562  ;;  %1103 = vbcast.lane.b32.xlu0 %v1101_v53, 256 }
 0x6d4   :  { %986 = vperm.xlu1 %3527, %v4415_v23   ;;  %v3565_v50 = vpop.eup %3564 }
 0x6d5   :  { %v4427_v51 = vpop.eup %3566 }
 0x6d7   :  { %1110 = vbcast.lane.b32.xlu0 %v1108_v54, 256 }
 0x6d8   :  { %989 = vperm.xlu1 %3527, %v4418_v47  }
 0x6db   :  { %1117 = vbcast.lane.b32.xlu0 %v1115_v55, 256 }
 0x6dc   :  { %992 = vperm.xlu1 %3527, %v4421_v49  }
 0x6df   :  { %1124 = vbcast.lane.b32.xlu0 %v1122_v56, 256 }
 0x6e0   :  { %995 = vperm.xlu1 %3527, %v4424_v21  }
 0x6e3   :  { %1131 = vbcast.lane.b32.xlu0 %v1129_v57, 256 }
 0x6e4   :  { %998 = vperm.xlu1 %3527, %v3565_v50  }
 0x6e7   :  { %1138 = vbcast.lane.b32.xlu0 %v1136_v58, 256 }
 0x6e8   :  { %1001 = vperm.xlu1 %3527, %v4427_v51  }
 0x6eb   :  { %1145 = vbcast.lane.b32.xlu0 %v1143_v59, 256 }
 0x6ef   :  { %1152 = vbcast.lane.b32.xlu0 %v1150_v60, 256 }
 0x74e   :  { %v981_v1 = vpop.permute.xlu0 %980 }
 0x74f   :  { %v984_v61 = vpop.permute.xlu1 %983  ;;  %v1006_v10 = vrot.slane %v981_v1, %v4362_v41 }
 0x750   :  { %v1010_v9 = vrot.slane %v984_v61, %v4362_v41 }
 0x752   :  { %v1035_v18 = vsel %vm887_vm5, %v1010_v9, %v1006_v10  ;;  %v1104_v40 = vpop.permute.xlu0 %1103 }
 0x753   :  { %v987_v62 = vpop.permute.xlu1 %986 }
 0x754   :  { %v1014_v11 = vrot.slane %v987_v62, %v4362_v41 }
 0x756   :  { %v1036_v20 = vsel %vm889_vm6, %v1014_v11, %v1035_v18  ;;  %v1111_v43 = vpop.permute.xlu0 %1110 }
 0x757   :  { %v990_v63 = vpop.permute.xlu1 %989 }
 0x758   :  { %v1018_v12 = vrot.slane %v990_v63, %v4362_v41 }
 0x75a   :  { %v1037_v25 = vsel %vm891_vm7, %v1018_v12, %v1036_v20  ;;  %v1118_v44 = vpop.permute.xlu0 %1117 }
 0x75b   :  { %v993_v0 = vpop.permute.xlu1 %992 }
 0x75c   :  { %v1022_v13 = vrot.slane %v993_v0, %v4362_v41 }
 0x75e   :  { %v1038_v26 = vsel %vm893_vm8, %v1022_v13, %v1037_v25  ;;  %v1125_v46 = vpop.permute.xlu0 %1124 }
 0x75f   :  { %v996_v8 = vpop.permute.xlu1 %995 }
 0x760   :  { %v1026_v19 = vrot.slane %v996_v8, %v4362_v41 }
 0x762   :  { %v1039_v30 = vsel %vm895_vm9, %v1026_v19, %v1038_v26  ;;  %v1132_v48 = vpop.permute.xlu0 %1131 }
 0x763   :  { %v999_v17 = vpop.permute.xlu1 %998 }
 0x764   :  { %v1030_v24 = vrot.slane %v999_v17, %v4362_v41 }
 0x766   :  { %v1040_v34 = vsel %vm897_vm10, %v1030_v24, %v1039_v30  ;;  %v1139_v57 = vpop.permute.xlu0 %1138 }
 0x767   :  { %v1002_v29 = vpop.permute.xlu1 %1001 }
 0x768   :  { %v1034_v31 = vrot.slane %v1002_v29, %v4362_v41 }
 0x76a   :  { %v1041_v35 = vsel %vm899_vm11, %v1034_v31, %v1040_v34  ;;  %v1146_v1 = vpop.permute.xlu0 %1145 }
 0x76b   :  { %v1043_v36 = vsel %vm902_vm12, %v1041_v35, 0.0 }
 0x76c   :  { %1044 = vadd.xlane.f32.xlu1 %v1043_v36 }
 0x76e   :  { %v1153_v19 = vpop.permute.xlu0 %1152 }
 0x7f9   :  { %v1045_v45 = vpop.xlane.xlu1 %1044 }
 0x7fa   :  { %3568 = vrcp.f32 %v1045_v45 }
 0x804   :  { %v3569_v52 = vpop.eup %3568 }
 0x805   :  { %v1075_v53 = vrot.slane %v3569_v52, %v4401_v28  ;;  %v1051_v54 = vrot.slane %v3569_v52, %v4307_v32  ;;  %v1055_v55 = vrot.slane %v3569_v52, %v4381_v2  ;;  %v1059_v56 = vrot.slane %v3569_v52, %v4384_v5 }
 0x806   :  { %v1063_v60 = vrot.slane %v3569_v52, %v4387_v6  ;;  %v1067_v8 = vrot.slane %v3569_v52, %v4393_v14  ;;  %v1079_v13 = vrot.slane %v3569_v52, %v4405_v33 }
 0x807   :  { %v1088_v58 = vmul.f32 %v4408_v37, %v1051_v54  ;;  %v1089_v59 = vmul.f32 %v4410_v38, %v1055_v55  ;;  %v1094_v61 = vmul.f32 %v3565_v50, %v1075_v53  ;;  %v1090_v0 = vmul.f32 %v4415_v23, %v1059_v56 }
 0x808   :  { %v1091_v11 = vmul.f32 %v4418_v47, %v1063_v60  ;;  %v1092_v37 = vmul.f32 %v4421_v49, %v1067_v8  ;;  %v1071_v38 = vrot.slane %v3569_v52, %v4397_v22  ;;  %v1095_v18 = vmul.f32 %v4427_v51, %v1079_v13 }
 0x809   :  { %v1162_v62 = vmul.f32 %v1104_v40, %v1088_v58  ;;  %v1163_v63 = vmul.f32 %v1111_v43, %v1089_v59  ;;  %v4463_v9 = vmul.f32 %v1146_v1, %v1094_v61  ;;  %v1164_v10 = vmul.f32 %v1118_v44, %v1090_v0  ;;  %v1295_v1 = vld [vmem:[%s4844_s1] sm:$0xff] }
 0x80a   :  { %v1165_v50 = vmul.f32 %v1125_v46, %v1091_v11  ;;  %v1166_v23 = vmul.f32 %v1132_v48, %v1092_v37  ;;  %v1093_v12 = vmul.f32 %v4424_v21, %v1071_v38  ;;  %v1169_v47 = vmul.f32 %v1153_v19, %v1095_v18  ;;  %3324 = vmatpush3.msra.mxu1 %v1295_v1 }
 0x80b   :  { %1179 = vperm.xlu0 %3526, %v1162_v62   ;;  %1182 = vperm.xlu1 %3527, %v1163_v63  }
 0x80c   :  { %v1167_v17 = vmul.f32 %v1139_v57, %v1093_v12  ;;  %v3154_v57 = vld [vmem:[%s4792_s20] ss:$0 sm:$0xff]  ;;  %3333 = vmatprep.subr.mxu1 %v3862_v7 }
 0x80f   :  { %1185 = vperm.xlu0 %3526, %v1164_v10   ;;  %1197 = vperm.xlu1 %3527, %v4463_v9  }
 0x813   :  { %1188 = vperm.xlu0 %3526, %v1165_v50  }
 0x817   :  { %1191 = vperm.xlu0 %3526, %v1166_v23  }
 0x81b   :  { %1194 = vperm.xlu0 %3526, %v1167_v17  }
 0x81f   :  { %1200 = vperm.xlu0 %3526, %v1169_v47  }
 0x88a   :  { %v1180_v20 = vpop.permute.xlu0 %1179  ;;  %v1183_v49 = vpop.permute.xlu1 %1182 }
 0x88b   :  { %v1209_v26 = vrot.slane %v1183_v49, %v4362_v41  ;;  %v1205_v29 = vrot.slane %v1180_v20, %v4362_v41 }
 0x88d   :  { %v1234_v51 = vsel %vm887_vm5, %v1209_v26, %v1205_v29  ;;  %v1298_v26 = vld [vmem:[%s4844_s1 + $0x18] sm:$0xff] }
 0x88e   :  { %v1186_v24 = vpop.permute.xlu0 %1185  ;;  %v1198_v40 = vpop.permute.xlu1 %1197 }
 0x88f   :  { %v1213_v21 = vrot.slane %v1186_v24, %v4362_v41  ;;  %v1229_v48 = vrot.slane %v1198_v40, %v4362_v41 }
 0x891   :  { %v1235_v35 = vsel %vm889_vm6, %v1213_v21, %v1234_v51 }
 0x892   :  { %v1189_v25 = vpop.permute.xlu0 %1188 }
 0x893   :  { %v1217_v31 = vrot.slane %v1189_v25, %v4362_v41 }
 0x895   :  { %v1236_v43 = vsel %vm891_vm7, %v1217_v31, %v1235_v35  ;;  %v1299_v31 = vld [vmem:[%s4844_s1 + $0x20] sm:$0xff] }
 0x896   :  { %v1192_v30 = vpop.permute.xlu0 %1191 }
 0x897   :  { %v1221_v34 = vrot.slane %v1192_v30, %v4362_v41 }
 0x899   :  { %v1237_v45 = vsel %vm893_vm8, %v1221_v34, %v1236_v43 }
 0x89a   :  { %v1195_v36 = vpop.permute.xlu0 %1194 }
 0x89b   :  { %v1225_v44 = vrot.slane %v1195_v36, %v4362_v41  ;;  %v1300_v36 = vld [vmem:[%s4844_s1 + $0x28] sm:$0xff] }
 0x89d   :  { %v1238_v46 = vsel %vm895_vm9, %v1225_v44, %v1237_v45  ;;  %v1301_v45 = vld [vmem:[%s4844_s1 + $0x30] sm:$0xff] }
 0x89e   :  { %v1201_v52 = vpop.permute.xlu0 %1200  ;;  %v1239_v54 = vsel %vm897_vm10, %v1229_v48, %v1238_v46 }
 0x89f   :  { %v1233_v53 = vrot.slane %v1201_v52, %v4362_v41 }
 0x8a1   :  { %v1240_v55 = vsel %vm899_vm11, %v1233_v53, %v1239_v54  ;;  %v1302_v53 = vld [vmem:[%s4844_s1 + $0x38] sm:$0xff] }
 0x8a2   :  { %v1242_v56 = vsel %vm902_vm12, %v1240_v55, 0.0 }
 0x8a3   :  { %1243 = vadd.xlane.f32.xlu1 %v1242_v56 }
 0x8b4   :  { %2008 = vrot.lane.b32.xlu1 %v3154_v57, %s3864_s21 }
 0x930   :  { %v1244_v58 = vpop.xlane.xlu1 %1243 }
 0x931   :  { %3570 = vrcp.f32 %v1244_v58 }
 0x934   :  { %v2009_v1 = vpop.permute.xlu1 %2008 }
 0x93b   :  { %v3571_v59 = vpop.eup %3570 }
 0x93c   :  { %v1250_v60 = vrot.slane %v3571_v59, %v4307_v32  ;;  %v1254_v0 = vrot.slane %v3571_v59, %v4381_v2  ;;  %v1258_v11 = vrot.slane %v3571_v59, %v4384_v5  ;;  %v1262_v38 = vrot.slane %v3571_v59, %v4387_v6 }
 0x93d   :  { %v1266_v13 = vrot.slane %v3571_v59, %v4393_v14  ;;  %v1270_v18 = vrot.slane %v3571_v59, %v4397_v22  ;;  %v1278_v24 = vrot.slane %v3571_v59, %v4405_v33 }
 0x93e   :  { %v1287_v61 = vmul.f32 %v1250_v60, %v1162_v62  ;;  %v1288_v8 = vmul.f32 %v1254_v0, %v1163_v63  ;;  %v1289_v37 = vmul.f32 %v1258_v11, %v1164_v10  ;;  %v1296_v62 = vld [vmem:[%s4844_s1 + $0x8] sm:$0xff]  ;;  %v1290_v12 = vmul.f32 %v1262_v38, %v1165_v50  ;;  %v3153_v50 = vld [vmem:[%s4791_s19] ss:$0 sm:$0xff]  ;;  %v2053_v38 = vld [vmem:[%s4796_s24 + $0x18] sm:$0xff] }
 0x93f   :  { %3329 = vmatpush3.msra.mxu0 %v1296_v62  ;;  %v1291_v63 = vmul.f32 %v1266_v13, %v1166_v23  ;;  %v1292_v19 = vmul.f32 %v1270_v18, %v1167_v17  ;;  %v1274_v10 = vrot.slane %v3571_v59, %v4401_v28  ;;  %v1294_v49 = vmul.f32 %v1278_v24, %v1169_v47  ;;  %v1297_v17 = vld [vmem:[%s4844_s1 + $0x10] sm:$0xff]  ;;  %v2051_v11 = vld [vmem:[%s4796_s24 + $0x8] sm:$0xff]  ;;  %s4845_s1 = smov 8  }
 0x940   :  { %1305 = vperm.xlu0 %3526, %v1287_v61   ;;  %3338 = vmatprep.subr.mxu0 %v3862_v7  ;;  %v2055_v13 = vld [vmem:[%s4796_s24 + $0x28] sm:$0xff]  ;;  %v2056_v18 = vld [vmem:[%s4796_s24 + $0x30] sm:$0xff] }
 0x941   :  { %v1293_v20 = vmul.f32 %v1274_v10, %v4463_v9 }
 0x944   :  { %1385 = vperm.xlu0 %3526, %v1288_v8   ;;  %v2011_v8 = vmul.f32 %v2009_v1, %v4266_v3 }
 0x948   :  { %1465 = vperm.xlu0 %3526, %v1289_v37  }
 0x94c   :  { %1545 = vperm.xlu0 %3526, %v1290_v12   ;;  %v2054_v12 = vld [vmem:[%s4796_s24 + $0x20] sm:$0xff] }
 0x950   :  { %1625 = vperm.xlu0 %3526, %v1291_v63   ;;  %v3484_v63 = vpack.c.bf16 %v2055_v13, %v2054_v12 }
 0x954   :  { %1705 = vperm.xlu0 %3526, %v1292_v19   ;;  %v2057_v19 = vld [vmem:[%s4796_s24 + $0x38] sm:$0xff] }
 0x955   :  { %v3487_v10 = vpack.c.bf16 %v2057_v19, %v2056_v18 }
 0x958   :  { %1785 = vperm.xlu0 %3526, %v1293_v20  }
 0x95c   :  { %1865 = vperm.xlu0 %3526, %v1294_v49  }
 0x960   :  { %1990 = vrot.lane.b32.xlu0 %v3153_v50, %s3865_s28 }
 0x9bf   :  { %v1306_v23 = vpop.permute.xlu0 %1305 }
 0x9c0   :  { %v1310_v25 = vrot.slane %v1306_v23, %v4362_v41 }
 0x9c2   :  { %3326 = vmatmul.mubr.msk.f32.vlgmr.msra.gmra.mrb[6].mxu1 %vm902_vm12, %v1310_v25 }
 0x9c3   :  { %v1386_v9 = vpop.permute.xlu0 %1385  ;;  %3334 = vmatpush3.msra.mxu1 %v1297_v17  ;;  %3335 = vmatprep.mubr.msk.f32.mxu1 %vm3861_vm0, %v3862_v7  ;;  %v3152_v17 = vld [vmem:[%s4790_s18] ss:$0 sm:$0xff] }
 0x9c4   :  { %v1390_v47 = vrot.slane %v1386_v9, %v4362_v41  ;;  %3343 = vmatprep.subr.mxu1 %v3862_v7 }
 0x9c6   :  { %v2329_v29 = vsel %vm887_vm5, %v1390_v47, %v1310_v25  ;;  %3331 = vmatmul.mubr.msk.f32.vlgmr.msra.gmra.mrb[4].mxu0 %vm902_vm12, %v1390_v47 }
 0x9c7   :  { %v1466_v21 = vpop.permute.xlu0 %1465  ;;  %3339 = vmatpush3.msra.mxu0 %v1298_v26  ;;  %3340 = vmatprep.mubr.msk.f32.mxu0 %vm3861_vm0, %v3862_v7 }
 0x9c8   :  { %v1470_v30 = vrot.slane %v1466_v21, %v4362_v41  ;;  %3348 = vmatprep.subr.mxu0 %v3862_v7 }
 0x9ca   :  { %v2330_v34 = vsel %vm889_vm6, %v1470_v30, %v2329_v29  ;;  %3336 = vmatmul.mubr.msk.f32.vlgmr.msra.gmra.mrb[8].mxu1 %vm902_vm12, %v1470_v30 }
 0x9cb   :  { %v1546_v51 = vpop.permute.xlu0 %1545  ;;  %3344 = vmatpush3.msra.mxu1 %v1299_v31  ;;  %3345 = vmatprep.mubr.msk.f32.mxu1 %vm3861_vm0, %v3862_v7 }
 0x9cc   :  { %v1550_v35 = vrot.slane %v1546_v51, %v4362_v41  ;;  %3353 = vmatprep.subr.mxu1 %v3862_v7 }
 0x9ce   :  { %v2331_v40 = vsel %vm891_vm7, %v1550_v35, %v2330_v34  ;;  %3341 = vmatmul.mubr.msk.f32.vlgmr.msra.gmra.mrb[6].mxu0 %vm902_vm12, %v1550_v35 }
 0x9cf   :  { %v1626_v43 = vpop.permute.xlu0 %1625  ;;  %3349 = vmatpush3.msra.mxu0 %v1300_v36  ;;  %3350 = vmatprep.mubr.msk.f32.mxu0 %vm3861_vm0, %v3862_v7 }
 0x9d0   :  { %v1630_v44 = vrot.slane %v1626_v43, %v4362_v41  ;;  %3358 = vmatprep.subr.mxu0 %v3862_v7 }
 0x9d2   :  { %v2332_v46 = vsel %vm893_vm8, %v1630_v44, %v2331_v40  ;;  %3346 = vmatmul.mubr.msk.f32.vlgmr.msra.gmra.mrb[10].mxu1 %vm902_vm12, %v1630_v44 }
 0x9d3   :  { %v1706_v48 = vpop.permute.xlu0 %1705  ;;  %3354 = vmatpush3.msra.mxu1 %v1301_v45  ;;  %3355 = vmatprep.mubr.msk.f32.mxu1 %vm3861_vm0, %v3862_v7 }
 0x9d4   :  { %v1710_v52 = vrot.slane %v1706_v48, %v4362_v41  ;;  %3477 = vmatprep.subr.bf16.mxu1 %v3860_v4 }
 0x9d6   :  { %v2333_v54 = vsel %vm895_vm9, %v1710_v52, %v2332_v46  ;;  %3351 = vmatmul.mubr.msk.f32.vlgmr.msra.gmra.mrb[8].mxu0 %vm902_vm12, %v1710_v52 }
 0x9d7   :  { %v1786_v55 = vpop.permute.xlu0 %1785  ;;  %3359 = vmatpush3.msra.mxu0 %v1302_v53  ;;  %3360 = vmatprep.mubr.msk.f32.mxu0 %vm3861_vm0, %v3862_v7 }
 0x9d8   :  { %v1790_v56 = vrot.slane %v1786_v55, %v4362_v41  ;;  %3495 = vmatprep.subr.bf16.mxu0 %v3860_v4 }
 0x9da   :  { %3356 = vmatmul.mubr.msk.f32.vlgmr.msra.gmra.mrb[12].mxu1 %vm902_vm12, %v1790_v56  ;;  %v2334_v57 = vsel %vm897_vm10, %v1790_v56, %v2333_v54 }
 0x9db   :  { %v1866_v58 = vpop.permute.xlu0 %1865  ;;  %3379 = vmatprep.mubr.msk.f32.mxu1 %vm3861_vm0, %v3862_v7 }
 0x9dc   :  { %v1870_v59 = vrot.slane %v1866_v58, %v4362_v41  ;;  %v2050_v41 = vld [vmem:[%s4796_s24] sm:$0xff] }
 0x9dd   :  { %v3478_v37 = vpack.c.bf16 %v2051_v11, %v2050_v41 }
 0x9de   :  { %3361 = vmatmul.mubr.msk.f32.vlgmr.msra.gmra.mrb[10].mxu0 %vm902_vm12, %v1870_v59  ;;  %v4574_v60 = vsel %vm899_vm11, %v1870_v59, %v2334_v57 }
 0x9df   :  { %v1991_v61 = vpop.permute.xlu0 %1990  ;;  %3401 = vmatprep.mubr.msk.f32.mxu0 %vm3861_vm0, %v3862_v7  ;;  %3479 = vmatpush3.bf16.msra.mxu1 %v3478_v37 }
 0x9e0   :  { %v1993_v0 = vmul.f32 %v1991_v61, %v4289_v15  ;;  %3480 = vmatprep.subr.bf16.mxu1 %v3860_v4  ;;  %v2052_v15 = vld [vmem:[%s4796_s24 + $0x10] sm:$0xff] }
 0x9e1   :  { %v3481_v62 = vpack.c.bf16 %v2053_v38, %v2052_v15 }
 0x9e2   :  { %1995 = vrot.lane.b32.xlu0 %v1993_v0, %s3864_s21 }
 0x9e3   :  { %3482 = vmatpush3.bf16.msra.mxu1 %v3481_v62 }
 0x9e4   :  { %3483 = vmatprep.subr.bf16.mxu1 %v3860_v4 }
 0x9e6   :  { %2013 = vrot.lane.b32.xlu0 %v2011_v8, %s3865_s28 }
 0x9e7   :  { %3485 = vmatpush3.bf16.msra.mxu1 %v3484_v63 }
 0x9e8   :  { %3486 = vmatprep.subr.bf16.mxu1 %v3860_v4 }
 0x9eb   :  { %3488 = vmatpush3.bf16.msra.mxu1 %v3487_v10  ;;  %v2046_v10 = vld [vmem:[%s4795_s23] sm:$0xff] }
 0x9ec   :  { %3489 = vmatprep.subr.bf16.mxu1 %v3860_v4 }
 0xa54   :  { %v1996_v20 = vpop.permute.xlu0 %1995 }
 0xa55   :  { %v1998_v24 = vsel %vm341_vm3, %v1996_v20, 0.0  ;;  %v2047_v20 = vld [vmem:[%s4795_s23 + $0x8] sm:$0xff] }
 0xa56   :  { %1999 = vadd.xlane.f32.xlu1 %v1998_v24 }
 0xa58   :  { %v2014_v49 = vpop.permute.xlu0 %2013 }
 0xa59   :  { %v2016_v50 = vsel %vm341_vm3, %v2014_v49, 0.0 }
 0xa5a   :  { %2017 = vadd.xlane.f32.xlu0 %v2016_v50 }
 0xa95   :  { %v1379_v23 = vpop.f32.mrb[6].mxu1 }
 0xa96   :  { %v3327_v25 = vpop.f32.mrb[7].mxu1  ;;  %v1950_v21 = vmul.f32 %v3152_v17, %v1379_v23 }
 0xa99   :  { %v1459_v9 = vpop.f32.mrb[4].mxu0 }
 0xa9a   :  { %v1951_v47 = vmul.f32 %v3152_v17, %v1459_v9  ;;  %v2066_v26 = vrot.slane %v1459_v9, 7  ;;  %v3332_v29 = vpop.f32.mrb[5].mxu0 }
 0xa9b   :  { %v2048_v29 = vld [vmem:[%s4795_s23 + $0x10] sm:$0xff] }
 0xa9c   :  { %v1966_v30 = vrot.slane %v1951_v47, 7  ;;  %v2067_v31 = vsel %vm887_vm5, %v2066_v26, %v1379_v23  ;;  %v3490_v47 = vpack.c.bf16 %v2047_v20, %v2046_v10 }
 0xa9d   :  { %v1539_v34 = vpop.f32.mrb[8].mxu1 }
 0xa9e   :  { %v1967_v51 = vsel %vm887_vm5, %v1966_v30, %v1950_v21  ;;  %v1952_v35 = vmul.f32 %v3152_v17, %v1539_v34  ;;  %v2068_v36 = vrot.slane %v1539_v34, 6  ;;  %v3337_v40 = vpop.f32.mrb[9].mxu1  ;;  %v2049_v21 = vld [vmem:[%s4795_s23 + $0x18] sm:$0xff] }
 0xa9f   :  { %v3493_v34 = vpack.c.bf16 %v2049_v21, %v2048_v29 }
 0xaa0   :  { %v1968_v43 = vrot.slane %v1952_v35, 6  ;;  %v2069_v44 = vsel %vm889_vm6, %v2068_v36, %v2067_v31  ;;  %v2339_v35 = vld [vmem:[#allocation14] sm:$0xff] }
 0xaa1   :  { %v1619_v45 = vpop.f32.mrb[6].mxu0  ;;  %v2343_v36 = vrot.slane %v2339_v35, %v4307_v32  ;;  %v2357_v40 = vrot.slane %v2339_v35, %v4384_v5  ;;  %v2224_v32 = vld [vmem:[%s4797_s25 + $0x10] sm:$0xff]  ;;  %v2225_v5 = vld [vmem:[%s4797_s25 + $0x18] sm:$0xff] }
 0xaa2   :  { %v1969_v46 = vsel %vm889_vm6, %v1968_v43, %v1967_v51  ;;  %v1953_v48 = vmul.f32 %v3152_v17, %v1619_v45  ;;  %v2070_v52 = vrot.slane %v1619_v45, 5  ;;  %v3342_v53 = vpop.f32.mrb[7].mxu0  ;;  %v2371_v43 = vrot.slane %v2339_v35, %v4393_v14 }
 0xaa3   :  { %2345 = vbcast.lane.b32.xlu1 %v2343_v36, 256  ;;  %v3499_v14 = vpack.c.bf16 %v2225_v5, %v2224_v32 }
 0xaa4   :  { %v1970_v54 = vrot.slane %v1953_v48, 5  ;;  %v2071_v55 = vsel %vm891_vm7, %v2070_v52, %v2069_v44  ;;  %v2222_v44 = vld [vmem:[%s4797_s25] sm:$0xff] }
 0xaa5   :  { %v1699_v56 = vpop.f32.mrb[10].mxu1 }
 0xaa6   :  { %v1971_v57 = vsel %vm891_vm7, %v1970_v54, %v1969_v46  ;;  %v1954_v58 = vmul.f32 %v3152_v17, %v1699_v56  ;;  %v2072_v59 = vrot.slane %v1699_v56, 4  ;;  %v3347_v61 = vpop.f32.mrb[11].mxu1  ;;  %v2385_v46 = vrot.slane %v2339_v35, %v4401_v28 }
 0xaa7   :  { %2359 = vbcast.lane.b32.xlu1 %v2357_v40, 256 }
 0xaa8   :  { %v1972_v0 = vrot.slane %v1954_v58, 4  ;;  %v2073_v1 = vsel %vm893_vm8, %v2072_v59, %v2071_v55  ;;  %v3156_v55 = vld [vmem:[#allocation3] ss:$0 sm:$0xff] }
 0xaa9   :  { %v1779_v8 = vpop.f32.mrb[8].mxu0 }
 0xaaa   :  { %v1973_v41 = vsel %vm893_vm8, %v1972_v0, %v1971_v57  ;;  %v1955_v11 = vmul.f32 %v3152_v17, %v1779_v8  ;;  %v2074_v37 = vrot.slane %v1779_v8, 3  ;;  %v3352_v15 = vpop.f32.mrb[9].mxu0  ;;  %v2350_v8 = vrot.slane %v2339_v35, %v4381_v2 }
 0xaab   :  { %2373 = vbcast.lane.b32.xlu1 %v2371_v43, 256  ;;  %v2378_v15 = vrot.slane %v2339_v35, %v4397_v22 }
 0xaac   :  { %v1974_v38 = vrot.slane %v1955_v11, 3  ;;  %v2075_v62 = vsel %vm895_vm9, %v2074_v37, %v2073_v1  ;;  %v2364_v11 = vrot.slane %v2339_v35, %v4387_v6 }
 0xaad   :  { %v1859_v12 = vpop.f32.mrb[12].mxu1 }
 0xaae   :  { %v1956_v13 = vmul.f32 %v3152_v17, %v1859_v12  ;;  %v2076_v63 = vrot.slane %v1859_v12, 2  ;;  %v3357_v18 = vpop.f32.mrb[13].mxu1  ;;  %v1975_v19 = vsel %vm895_vm9, %v1974_v38, %v1973_v41  ;;  %v3868_v12 = vmov 1.0  }
 0xaaf   :  { %2387 = vbcast.lane.b32.xlu1 %v2385_v46, 256 }
 0xab0   :  { %v1976_v24 = vrot.slane %v1956_v13, 2  ;;  %v2077_v49 = vsel %vm897_vm10, %v2076_v63, %v2075_v62  ;;  %v2392_v62 = vrot.slane %v2339_v35, %v4405_v33 }
 0xab1   :  { %v1939_v50 = vpop.f32.mrb[10].mxu0 }
 0xab2   :  { %v1957_v23 = vmul.f32 %v3152_v17, %v1939_v50  ;;  %v2078_v25 = vrot.slane %v1939_v50, 1  ;;  %v3362_v9 = vpop.f32.mrb[11].mxu0  ;;  %v1977_v26 = vsel %vm897_vm10, %v1976_v24, %v1975_v19 }
 0xab4   :  { %v1978_v30 = vrot.slane %v1957_v23, 1  ;;  %v4640_v31 = vsel %vm899_vm11, %v2078_v25, %v2077_v49 }
 0xab5   :  { %3380 = vmatmul.mubr.msk.f32.vlgmr.msra.gmra.mrb[14].mxu1 %vm252_vm2, %v4640_v31 }
 0xab6   :  { %3491 = vmatpush3.bf16.msra.mxu1 %v3490_v47  ;;  %v1979_v17 = vsel %vm899_vm11, %v1978_v30, %v1977_v26  ;;  %3390 = vmatprep.mubr.msk.f32.mxu1 %vm3861_vm0, %v3862_v7 }
 0xab7   :  { %3492 = vmatprep.subr.bf16.mxu1 %v3860_v4  ;;  %v1981_v51 = vsel %vm252_vm2, %v1979_v17, 0.0 }
 0xab8   :  { %1982 = vadd.xlane.f32.xlu0 %v1981_v51 }
 0xaba   :  { %3494 = vmatpush3.bf16.msra.mxu1 %v3493_v34  ;;  %v3160_v34 = vld [vmem:[%s4798_s26] ss:$0 sm:$0xff]  ;;  %s3869_s26 = smov [#allocation22]  }
 0xabb   :  { %3424 = vmatprep.subr.mxu1 %v3862_v7 }
 0xabc   :  { %2029 = vadd.xlane.f32.xlu0 %v4247_v42  ;;  %v2223_v42 = vld [vmem:[%s4797_s25 + $0x8] sm:$0xff] }
 0xabd   :  { %3391 = vmatmul.mubr.msk.f32.vlgmr.msra.gmra.mrb[14].mxu1 %vm341_vm3, %v4293_v16  ;;  %v3496_v45 = vpack.c.bf16 %v2223_v42, %v2222_v44 }
 0xabe   :  { %3426 = vmatprep.mubr.msk.f32.mxu1 %vm3861_vm0, %v3862_v7 }
 0xabf   :  { %3497 = vmatpush3.bf16.msra.mxu0 %v3496_v45 }
 0xac0   :  { %3498 = vmatprep.subr.bf16.mxu0 %v3860_v4 }
 0xac3   :  { %3500 = vmatpush3.bf16.msra.mxu0 %v3499_v14 }
 0xac4   :  { %3404 = vmatprep.subr.mxu0 %v3862_v7 }
 0xae3   :  { %v2000_v52 = vpop.xlane.xlu1 %1999 }
 0xae7   :  { %v2018_v48 = vpop.xlane.xlu0 %2017 }
 0xb15   :  { %v2346_v41 = vpop.permute.xlu1 %2345 }
 0xb16   :  { %vm2396_vm14 = vcmp.eq.s32.totalorder %v4358_v39, %v2346_v41 }
 0xb19   :  { %v2360_v37 = vpop.permute.xlu1 %2359 }
 0xb1a   :  { %vm2398_vm4 = vcmp.eq.s32.totalorder %v4358_v39, %v2360_v37 }
 0xb1d   :  { %v2374_v38 = vpop.permute.xlu1 %2373 }
 0xb1e   :  { %vm2400_vm13 = vcmp.eq.s32.totalorder %v4358_v39, %v2374_v38 }
 0xb1f   :  { %3425 = vmatpush3.msk.msra.mxu1 %vm2400_vm13, %v3868_v12 }
 0xb20   :  { %3434 = vmatprep.subr.mxu1 %v3862_v7 }
 0xb21   :  { %v2388_v19 = vpop.permute.xlu1 %2387 }
 0xb22   :  { %vm2402_vm1 = vcmp.eq.s32.totalorder %v4358_v39, %v2388_v19 }
 0xb45   :  { %v1983_v53 = vpop.xlane.xlu0 %1982 }
 0xb46   :  { %v2001_v28 = vadd.f32 %v2000_v52, %v1983_v53 }
 0xb48   :  { %v2019_v54 = vadd.f32 %v2018_v48, %v2001_v28 }
 0xb49   :  { %v2030_v4 = vpop.xlane.xlu0 %2029 }
 0xb4a   :  { %v2031_v56 = vadd.f32 %v2030_v4, %v2019_v54 }
 0xb4c   :  { %v2039_v57 = vadd.f32 %v3156_v55, %v2031_v56 }
 0xb4e   :  { %v3157_v58 = vmul.f32 -1.442695, %v2039_v57 }
 0xb50   :  { %3572 = vpow2.f32 %v3157_v58 }
 0xb5a   :  { %v3573_v59 = vpop.eup %3572 }
 0xb5b   :  { %v2043_v61 = vadd.f32 1.0, %v3573_v59 }
 0xb5d   :  { %3574 = vrcp.f32 %v2043_v61 }
 0xb67   :  { %v4673_v0 = vpop.eup %3574 }
 0xb68   :  { %v2323_v1 = vsub.f32 1.0, %v4673_v0 }
 0xb6a   :  { %2326 = vperm.xlu0 %3526, %v2323_v1  }
 0xb6e   :  { %2352 = vbcast.lane.b32.xlu0 %v2350_v8, 256 }
 0xb72   :  { %2366 = vbcast.lane.b32.xlu0 %v2364_v11, 256 }
 0xb76   :  { %2380 = vbcast.lane.b32.xlu0 %v2378_v15, 256 }
 0xb7a   :  { %2394 = vbcast.lane.b32.xlu0 %v2392_v62, 256 }
 0xb90   :  { %v2218_v2 = vpop.f32.mrb[14].mxu1 }
 0xb91   :  { %v3392_v13 = vpop.f32.mrb[15].mxu1  ;;  %3402 = vmatmul.mubr.msk.f32.vlgmr.msra.gmra.mrb[12].mxu0 %vm341_vm3, %v2218_v2 }
 0xb92   :  { %3405 = vmatpush3.msk.msra.mxu0 %vm2396_vm14, %v3868_v12  ;;  %3406 = vmatprep.mubr.msk.f32.mxu0 %vm3861_vm0, %v3862_v7 }
 0xb93   :  { %3409 = vmatprep.subr.mxu0 %v3862_v7 }
 0xbe9   :  { %v2327_v6 = vpop.permute.xlu0 %2326 }
 0xbea   :  { %v2337_v22 = vmul.f32 %v4574_v60, %v2327_v6 }
 0xbec   :  { %v2421_v33 = vcombine.high %v2337_v22, %v2337_v22  ;;  %v2428_v63 = vrot.slane %v2337_v22, %v4303_v27  ;;  %v3078_v22 = vsel %vm341_vm3, %v4293_v16, %v4266_v3 }
 0xbed   :  { %v2353_v18 = vpop.permute.xlu0 %2352 }
 0xbee   :  { %v2435_v10 = vrot.slane %v2421_v33, %v4303_v27  ;;  %v2436_v20 = vcombine.high %v2428_v63, %v2428_v63  ;;  %v2444_v24 = vrot.slane %v2428_v63, %v4303_v27  ;;  %vm2397_vm15 = vcmp.eq.s32.totalorder %v4358_v39, %v2353_v18 }
 0xbf0   :  { %v2451_v49 = vrot.slane %v2435_v10, %v4303_v27  ;;  %3407 = vmatmul.mubr.msk.f32.vlgmr.msra.gmra.mrb[14].mxu0 %vm902_vm12, %v2444_v24  ;;  %v2458_v23 = vrot.slane %v2436_v20, %v4303_v27  ;;  %v2466_v47 = vcombine.high %v2444_v24, %v2444_v24  ;;  %v2437_v26 = vcombine.high %v2435_v10, %v2435_v10 }
 0xbf1   :  { %3410 = vmatpush3.msk.msra.mxu0 %vm2397_vm15, %v3868_v12  ;;  %3411 = vmatprep.mubr.msk.f32.mxu0 %vm3861_vm0, %v3862_v7  ;;  %v2367_v50 = vpop.permute.xlu0 %2366 }
 0xbf2   :  { %3427 = vmatmul.mubr.msk.f32.vlgmr.msra.gmra.mrb[16].mxu1 %vm902_vm12, %v2451_v49  ;;  %3414 = vmatprep.subr.mxu0 %v3862_v7  ;;  %v2467_v25 = vcombine.high %v2451_v49, %v2451_v49  ;;  %vm2399_vm13 = vcmp.eq.s32.totalorder %v4358_v39, %v2367_v50  ;;  %v2468_v29 = vcombine.high %v2458_v23, %v2458_v23 }
 0xbf3   :  { %3435 = vmatpush3.msk.msra.mxu1 %vm2402_vm1, %v3868_v12  ;;  %3436 = vmatprep.mubr.msk.f32.mxu1 %vm3861_vm0, %v3862_v7  ;;  %v2465_v30 = vrot.slane %v2437_v26, %v4303_v27 }
 0xbf4   :  { %3412 = vmatmul.mubr.msk.f32.vlgmr.msra.gmra.mrb[16].mxu0 %vm902_vm12, %v2458_v23 }
 0xbf5   :  { %3415 = vmatpush3.msk.msra.mxu0 %vm2398_vm4, %v3868_v12  ;;  %3416 = vmatprep.mubr.msk.f32.mxu0 %vm3861_vm0, %v3862_v7  ;;  %v2381_v9 = vpop.permute.xlu0 %2380  ;;  %v2469_v17 = vcombine.high %v2465_v30, %v2465_v30 }
 0xbf6   :  { %3437 = vmatmul.mubr.msk.f32.vlgmr.msra.gmra.mrb[18].mxu1 %vm902_vm12, %v2467_v25  ;;  %3419 = vmatprep.subr.mxu0 %v3862_v7  ;;  %vm2401_vm14 = vcmp.eq.s32.totalorder %v4358_v39, %v2381_v9 }
 0xbf8   :  { %3417 = vmatmul.mubr.msk.f32.vlgmr.msra.gmra.mrb[18].mxu0 %vm902_vm12, %v2466_v47 }
 0xbf9   :  { %3420 = vmatpush3.msk.msra.mxu0 %vm2399_vm13, %v3868_v12  ;;  %3421 = vmatprep.mubr.msk.f32.mxu0 %vm3861_vm0, %v3862_v7  ;;  %v2395_v21 = vpop.permute.xlu0 %2394 }
 0xbfa   :  { %3429 = vmatprep.subr.mxu0 %v3862_v7  ;;  %vm2403_vm15 = vcmp.eq.s32.totalorder %v4358_v39, %v2395_v21 }
 0xbfc   :  { %3422 = vmatmul.mubr.msk.f32.vlgmr.msra.gmra.mrb[20].mxu0 %vm902_vm12, %v2468_v29 }
 0xbfd   :  { %3430 = vmatpush3.msk.msra.mxu0 %vm2401_vm14, %v3868_v12  ;;  %3431 = vmatprep.mubr.msk.f32.mxu0 %vm3861_vm0, %v3862_v7 }
 0xbfe   :  { %3439 = vmatprep.subr.mxu0 %v3862_v7 }
 0xc00   :  { %3432 = vmatmul.mubr.msk.f32.vlgmr.msra.gmra.mrb[22].mxu0 %vm902_vm12, %v2465_v30 }
 0xc01   :  { %3440 = vmatpush3.msk.msra.mxu0 %vm2403_vm15, %v3868_v12  ;;  %3441 = vmatprep.mubr.msk.f32.mxu0 %vm3861_vm0, %v3862_v7  ;;  %vm3081_vm0 = vcmask 72704  }
 0xc04   :  { %3442 = vmatmul.mubr.msk.f32.vlgmr.msra.gmra.mrb[24].mxu0 %vm902_vm12, %v2469_v17 }
 0xc64   :  { %v2302_v51 = vpop.f32.mrb[12].mxu0 }
 0xc65   :  { %v2303_v35 = vadd.f32 %v3160_v34, %v2302_v51  ;;  %v3403_v27 = vpop.f32.mrb[13].mxu0 }
 0xc67   :  { %v2306_v39 = vsel %vm252_vm2, %v2303_v35, -inf }
 0xc68   :  { %2307 = vmax.xlane.f32.xlu1 %v2306_v39 }
 0xc79   :  { %3075 = vrot.lane.b32.xlu1 %v4673_v0, %s4845_s1 }
 0xc7d   :  { %3072 = vrot.lane.b32.xlu1 %v4640_v31, %s3863_s10  ;;  %s3101_s10 = sshll.u32 %s3869_s26, 4  ;;  %s3102_s10 = int_to_ptr.vmem [resolvable:$true] %s3101_s10 }
 0xc7e   :  { %s3788_s28 = scalar_lea.vmem %s3102_s10, 256  ;;  %p3793_p6 = scmp.lt.s32.totalorder %s3102_s10, %s3102_s10 }
 0xc7f   :  { %p3789_p5 = scmp.ne.s32.totalorder %s3102_s10, %s3788_s28  ;;  %p3794_p7 = scmp.lt.s32.totalorder %s3788_s28, %s3788_s28 }
 0xc81   :  { %p3795_p8 = por %p3794_p7, %p3793_p6 }
 0xc83   :  { %p3796_p9 = pnand %p3795_p8, %p3789_p5 }
 0xcc3   :  { %v2538_v7 = vpop.f32.mrb[14].mxu0 }
 0xcc4   :  { %v3408_v36 = vpop.f32.mrb[15].mxu0 }
 0xcc5   :  { %v2826_v40 = vpop.f32.mrb[16].mxu1 }
 0xcc6   :  { %v3428_v43 = vpop.f32.mrb[17].mxu1  ;;  %v3060_v31 = vrot.slane %v2826_v40, 4 }
 0xcc7   :  { %v2610_v44 = vpop.f32.mrb[16].mxu0 }
 0xcc8   :  { %v3054_v42 = vrot.slane %v2610_v44, 7  ;;  %v3413_v45 = vpop.f32.mrb[17].mxu0 }
 0xcc9   :  { %v2970_v46 = vpop.f32.mrb[18].mxu1 }
 0xcca   :  { %v3055_v32 = vsel %vm887_vm5, %v3054_v42, %v2538_v7  ;;  %v3438_v5 = vpop.f32.mrb[19].mxu1  ;;  %v3064_v61 = vrot.slane %v2970_v46, 2 }
 0xccb   :  { %v2682_v14 = vpop.f32.mrb[18].mxu0 }
 0xccc   :  { %v3056_v48 = vrot.slane %v2682_v14, 6  ;;  %v3418_v52 = vpop.f32.mrb[19].mxu0 }
 0xcce   :  { %v3057_v53 = vsel %vm889_vm6, %v3056_v48, %v3055_v32 }
 0xccf   :  { %v2754_v28 = vpop.f32.mrb[20].mxu0 }
 0xcd0   :  { %v3058_v54 = vrot.slane %v2754_v28, 5  ;;  %v3423_v55 = vpop.f32.mrb[21].mxu0 }
 0xcd2   :  { %v3059_v4 = vsel %vm891_vm7, %v3058_v54, %v3057_v53 }
 0xcd3   :  { %v2898_v56 = vpop.f32.mrb[22].mxu0  ;;  %v3061_v57 = vsel %vm893_vm8, %v3060_v31, %v3059_v4 }
 0xcd4   :  { %v3062_v58 = vrot.slane %v2898_v56, 3  ;;  %v3433_v59 = vpop.f32.mrb[23].mxu0 }
 0xcd6   :  { %v3063_v1 = vsel %vm895_vm9, %v3062_v58, %v3061_v57 }
 0xcd7   :  { %v3042_v8 = vpop.f32.mrb[24].mxu0  ;;  %v3065_v41 = vsel %vm897_vm10, %v3064_v61, %v3063_v1 }
 0xcd8   :  { %v3066_v11 = vrot.slane %v3042_v8, 1  ;;  %v3443_v37 = vpop.f32.mrb[25].mxu0 }
 0xcda   :  { %v3067_v15 = vsel %vm899_vm11, %v3066_v11, %v3065_v41 }
 0xcf5   :  { %v2308_v38 = vpop.xlane.xlu1 %2307 }
 0xcf6   :  { %v2309_v62 = vsub.f32 %v2303_v35, %v2308_v38 }
 0xcf8   :  { %v2310_v12 = vmul.f32 1.442695, %v2309_v62 }
 0xcf9   :  { %v3076_v2 = vpop.permute.xlu1 %3075 }
 0xcfa   :  { %3576 = vpow2.f32 %v2310_v12  ;;  %v3080_v13 = vsel %vm902_vm12, %v4574_v60, %v3076_v2 }
 0xcfb   :  { %v3082_v6 = vsel %vm3081_vm0, %v3080_v13, 0.0 }
 0xcfc   :  { %3084 = vst [vmem:[#allocation22 + $0x8] sm:$0xff] %v3082_v6 }
 0xcfd   :  { %v3073_v33 = vpop.permute.xlu1 %3072 }
 0xcfe   :  { %v3079_v63 = vsel %vm252_vm2, %v3078_v22, %v3073_v33 }
 0xcff   :  { %3083 = vst [vmem:[#allocation22] sm:$0xff] %v3079_v63 }
 0xd04   :  { %v3577_v18 = vpop.eup %3576 }
 0xd05   :  { %v2312_v19 = vsel %vm252_vm2, %v3577_v18, 0.0 }
 0xd06   :  { %2313 = vadd.xlane.f32.xlu0 %v2312_v19 }
 0xd1c   :  { %2319 = vperm.xlu0 %3526, %v4673_v0  }
 0xd1d   :  { %3799 = shalt.err (!%p3796_p9)
}
 0xd1e   :  { %s4846_s7 = sld [smem:[#allocation46_spill]] }
 0xd24   :  { %s3800_s3 = scalar_lea.hbm %s4846_s7, 256 }
 0xd25   :  { %p3801_p10 = scmp.ne.s32.totalorder %s4846_s7, %s3800_s3  ;;  %p3804_p11 = scmp.lt.u32.totalorder %s3800_s3, %s4846_s7 }
 0xd27   :  { %p3806_p12 = pnand %p3804_p11, %p3801_p10 }
 0xd29   :  { %3809 = shalt.err (!%p3806_p12)
}
 0xd2a   :  { %3104 = dma.vmem_to_hbm [thread:$0]  %s3102_s10, 256, %s4846_s7, [#allocation23]  }
 0xd2b   :  { %s3870_s24 = smov [#allocation21]  }
 0xd2c   :  { %s3091_s27 = sshll.u32 %s3870_s24, 4  ;;  %s3092_s27 = int_to_ptr.vmem [resolvable:$true] %s3091_s27 }
 0xd2d   :  { %s3810_s29 = scalar_lea.vmem %s3092_s27, 128  ;;  %p3815_p0 = scmp.lt.s32.totalorder %s3092_s27, %s3092_s27 }
 0xd2e   :  { %p3811_p13 = scmp.ne.s32.totalorder %s3092_s27, %s3810_s29  ;;  %p3816_p1 = scmp.lt.s32.totalorder %s3810_s29, %s3810_s29 }
 0xd30   :  { %p3817_p2 = por %p3816_p1, %p3815_p0 }
 0xd32   :  { %p3818_p3 = pnand %p3817_p2, %p3811_p13 }
 0xd93   :  { %v2314_v3 = vpop.xlane.xlu0 %2313 }
 0xd94   :  { %3578 = vrcp.f32 %v2314_v3 }
 0xd9b   :  { %v2320_v0 = vpop.permute.xlu0 %2319 }
 0xd9e   :  { %v3579_v16 = vpop.eup %3578 }
 0xd9f   :  { %v2316_v60 = vmul.f32 %v3579_v16, %v3577_v18 }
 0xda1   :  { %v2322_v10 = vmul.f32 %v2320_v0, %v2316_v60 }
 0xda3   :  { %v2338_v20 = vsel %vm252_vm2, %v2322_v10, 0.0 }
 0xda4   :  { %v3069_v24 = vadd.f32 %v3067_v15, %v2338_v20 }
 0xda6   :  { %3070 = vst [vmem:[#allocation21] sm:$0xff] %v3069_v24 }
 0xda7   :  { %3821 = shalt.err (!%p3818_p3)
}
 0xda8   :  { %s4847_s4 = sld [smem:[#allocation45_spill]] }
 0xdae   :  { %s3822_s8 = scalar_lea.hbm %s4847_s4, 128 }
 0xdaf   :  { %p3823_p4 = scmp.ne.s32.totalorder %s4847_s4, %s3822_s8  ;;  %p3826_p5 = scmp.lt.u32.totalorder %s3822_s8, %s4847_s4 }
 0xdb1   :  { %p3828_p6 = pnand %p3826_p5, %p3823_p4 }
 0xdb3   :  { %3831 = shalt.err (!%p3828_p6)
}
 0xdb4   :  { %3094 = dma.vmem_to_hbm [thread:$0]  %s3092_s27, 128, %s4847_s4, [#allocation6]  }
 0xdb5   :  { %3844 = dma.done.wait [#allocation6], 128  }
 0xdb6   :  { %3845 = vsyncadd [#allocation6], 4294967168 }
 0xdb7   :  { %3846 = dma.done.wait [#allocation23], 256  }
 0xdb8   :  { %3847 = vsyncadd [#allocation23], 4294967040 }
 0xdb9   :  { %3111 = vsyncpa [#allocation5], 1 }
 0xdba   :  { %3112 = vsyncpa [#allocation10], 1 }
 0xdbb   :  { %3113 = vsyncpa [#allocation13], 1 }
 0xdbc   :  { %3114 = vsyncpa [#allocation16], 1 }
 0xdbd   :  { %3115 = vsyncpa [#allocation19], 1 }
 0xdbe   :  { %3116 = vsyncpa [#allocation6], 1 }
 0xdbf   :  { %3117 = vsyncpa [#allocation23], 1 }
 0xdc0   :  { %3118 = vsyncpa [#allocation7], 1 }

</bundles_post_ra>
